<compile_context>
chip_gen: v7x
topology: tpu7x:2x2x1
jax: 0.10.0
libtpu: 0.0.40
codegen_flags: <defaults>
</compile_context>

<pallas_src>
import jax
import jax.numpy as jnp
from jax.experimental import pallas as pl
from jax.experimental.pallas import tpu as pltpu

LN_EPS = 1e-12


def _bert_embeddings_kernel(ids_ref,      # SMEM  (B*S,) int32           (scalar prefetch)
                            pos_ref,      # VMEM  (tile_s, H)            positional tile
                            tt_ref,       # VMEM  (tile_s, 1) int32      token-type ids tile
                            wtab_hbm,     # HBM   (V, H)                 word table (pl.ANY)
                            ttab_ref,     # VMEM  (T, H)                 token-type table
                            gamma_ref,    # VMEM  (1, H) f32
                            beta_ref,     # VMEM  (1, H) f32
                            out_ref,      # VMEM  (tile_s, H)
                            gbuf,         # VMEM  (2, tile_s, H)         gather double buffer
                            sems):        # DMA sems (2,)                one per buffer slot
    tile_s = gbuf.shape[1]
    i = pl.program_id(0)
    n = pl.num_programs(0)
    slot = i % 2

    # (1) Cross-step pipelined word-embedding row gather.
    #     Rows of tile t land in gbuf[t & 1]; all rows of a tile signal the same
    #     per-slot semaphore so a single accumulated wait suffices.
    def issue(tile_idx, slot_idx):
        base = tile_idx * tile_s

        def body(r, carry):
            row = ids_ref[base + r]
            pltpu.make_async_copy(wtab_hbm.at[row],
                                  gbuf.at[slot_idx, r],
                                  sems.at[slot_idx]).start()
            return carry

        jax.lax.fori_loop(0, tile_s, body, 0, unroll=min(8, tile_s))

    @pl.when(i == 0)            # prime the very first tile
    def _():
        issue(0, 0)

    @pl.when(i + 1 < n)         # prefetch next tile into the other slot
    def _():
        issue(i + 1, 1 - slot)

    # (2) Token-type embedding: T-1 hoisted VPU selects (T is tiny, e.g. 2).
    tt = tt_ref[...]                                        # (tile_s, 1) int32
    T = ttab_ref.shape[0]
    rows = [ttab_ref[t:t + 1, :].astype(jnp.float32) for t in range(T)]
    tte = rows[T - 1]
    for t in range(T - 2, -1, -1):
        tte = jnp.where(tt == t, rows[t], tte)              # broadcasts to (tile_s, H)

    # (3) Single accumulated wait for this tile's gather (issued last step, or
    #     primed above for tile 0). Transfer size of the wait descriptor equals
    #     the sum of the tile_s row copies by construction (same dtype, same H).
    pltpu.make_async_copy(wtab_hbm.at[pl.ds(0, tile_s)],
                          gbuf.at[slot],
                          sems.at[slot]).wait()

    # (4) Three-way sum + LayerNorm over hidden (biased variance), f32 math,
    #     rsqrt on the EUP; store in the output dtype.
    x = gbuf[slot].astype(jnp.float32) + pos_ref[...].astype(jnp.float32) + tte
    u = jnp.mean(x, axis=-1, keepdims=True)
    d = x - u
    s = jnp.mean(d * d, axis=-1, keepdims=True)
    x_norm = d * jax.lax.rsqrt(s + LN_EPS)
    # TODO(synk): dropout is identity in eval mode; training-mode dropout not implemented.
    out_ref[...] = (gamma_ref[...] * x_norm + beta_ref[...]).astype(out_ref.dtype)


def bert_embeddings(input_ids, positional_enc, token_type_ids,
                    word_table, type_table, ln_gamma, ln_beta, *, tile_s=None):
    B, S = input_ids.shape
    V, H = word_table.shape
    T = type_table.shape[0]
    N = B * S

    if token_type_ids is None:
        token_type_ids = jnp.zeros((B, S), dtype=jnp.int32)

    # Positional encodings: (S, H) / (1, S, H) -> stream ONE copy and cycle the
    # block index over the grid; (B, S, H) -> stream per-example as before.
    pos = positional_enc
    if pos.ndim == 3 and pos.shape[0] == 1:
        pos = pos.reshape(pos.shape[1], pos.shape[2])
    per_position = (pos.ndim == 2)
    if per_position:
        assert pos.shape == (S, H)
    else:
        assert pos.shape == (B, S, H)
        pos = pos.reshape(N, H)

    if tile_s is None:
        lim = S if per_position else N
        tile_s = lim
        for cand in (1024, 512, 256, 128, 64, 32, 16, 8):
            if lim % cand == 0:
                tile_s = cand
                break
    assert N % tile_s == 0
    if per_position:
        assert S % tile_s == 0
    assert tile_s % 8 == 0, "tile_s must be a multiple of 8 (sublane granularity)"
    assert V >= tile_s  # accumulated-wait descriptor views tile_s rows of the table
    n_tiles = N // tile_s
    pos_blocks = (S // tile_s) if per_position else n_tiles

    # Dtype-preserving: no forced f32 upcast of the big streams in the wrapper.
    # TODO(synk): sub-32-bit tables use row-granular DMA; if a toolchain rejects
    # packed-row DMA, pack bf16 row pairs to u32 on the wrapper side.
    out_dtype = jnp.result_type(word_table.dtype, pos.dtype, type_table.dtype)

    ids_flat = input_ids.reshape(N).astype(jnp.int32)        # SMEM scalar prefetch
    tt_flat = token_type_ids.reshape(N, 1).astype(jnp.int32)
    gamma2d = ln_gamma.reshape(1, H).astype(jnp.float32)
    beta2d = ln_beta.reshape(1, H).astype(jnp.float32)

    if per_position:
        pos_idx_map = lambda i, ids: (i % pos_blocks, 0)
    else:
        pos_idx_map = lambda i, ids: (i, 0)

    # Explicit VMEM budget: double-buffered pos/out/tt streams + the (2,tile_s,H)
    # gather buffer + small tables, with 2x headroom (never below 32 MiB).
    def _b(n_elems, dt):
        return int(n_elems) * jnp.dtype(dt).itemsize
    est = (2 * _b(tile_s * H, pos.dtype)
           + 2 * _b(tile_s * H, out_dtype)
           + 2 * _b(tile_s * H, word_table.dtype)
           + 2 * _b(tile_s * 128, jnp.int32)
           + 2 * _b(T * H, type_table.dtype)
           + 4 * _b(H, jnp.float32))
    vmem_limit = int(min(128 << 20, max(32 << 20, 2 * est)))

    out_flat = pl.pallas_call(
        _bert_embeddings_kernel,
        out_shape=jax.ShapeDtypeStruct((N, H), out_dtype),
        grid_spec=pltpu.PrefetchScalarGridSpec(
            num_scalar_prefetch=1,                      # input ids -> SMEM
            grid=(n_tiles,),
            in_specs=[
                pl.BlockSpec((tile_s, H), pos_idx_map),            # positional tile
                pl.BlockSpec((tile_s, 1), lambda i, ids: (i, 0)),  # token-type ids tile
                pl.BlockSpec(memory_space=pl.ANY),                 # word table stays in HBM
                pl.BlockSpec((T, H), lambda i, ids: (0, 0)),       # token-type table (tiny)
                pl.BlockSpec((1, H), lambda i, ids: (0, 0)),       # LN gamma
                pl.BlockSpec((1, H), lambda i, ids: (0, 0)),       # LN beta
            ],
            out_specs=pl.BlockSpec((tile_s, H), lambda i, ids: (i, 0)),
            scratch_shapes=[
                pltpu.VMEM((2, tile_s, H), word_table.dtype),      # gather double buffer
                pltpu.SemaphoreType.DMA((2,)),                     # one sem per slot
            ],
        ),
        compiler_params=pltpu.CompilerParams(
            # "arbitrary": the gather prefetch carries state in scratch across
            # consecutive grid steps; megacore-splitting this axis would break it.
            dimension_semantics=("arbitrary",),
            vmem_limit_bytes=vmem_limit,
        ),
    )(ids_flat, pos, tt_flat, word_table, type_table, gamma2d, beta2d)

    return out_flat.reshape(B, S, H)


def _row_normalize(w, eps=1e-8):
    # mimics: weight / (||weight||_2 per-row + eps) as done in BertEmbeddings.__init__
    norm = jnp.sqrt(jnp.sum(w * w, axis=1, keepdims=True))
    return w / (norm + eps)


if __name__ == "__main__":
    # small config consistent with the module; H is lane-dense (multiple of 128)
    B, S, H = 2, 16, 128
    VOCAB, TYPE_VOCAB = 96, 2

    key = jax.random.PRNGKey(0)
    k_w, k_t, k_ids, k_tt, k_pos = jax.random.split(key, 5)

    word_table = _row_normalize(
        jax.random.normal(k_w, (VOCAB, H), dtype=jnp.float32))
    type_table = _row_normalize(
        jax.random.normal(k_t, (TYPE_VOCAB, H), dtype=jnp.float32))
    ln_gamma = jnp.ones((H,), dtype=jnp.float32)
    ln_beta = jnp.zeros((H,), dtype=jnp.float32)

    input_ids = jax.random.randint(k_ids, (B, S), 0, VOCAB, dtype=jnp.int32)
    token_type_ids = jax.random.randint(k_tt, (B, S), 0, TYPE_VOCAB, dtype=jnp.int32)
    # Per-position positional encoding (S, H), as in BERT; exercises the
    # single-copy cycling index_map.
    positional_enc = jax.random.normal(k_pos, (S, H), dtype=jnp.float32)

    # tile_s=8 -> 4 grid steps: exercises the cross-step gather pipeline
    # (prime + prefetch) and the cycling positional block index (S//tile_s = 2).
    out = bert_embeddings(input_ids, positional_enc, token_type_ids,
                          word_table, type_table, ln_gamma, ln_beta, tile_s=8)
    out = jax.block_until_ready(out)

    # reference check in plain JAX
    we = word_table[input_ids]
    te = type_table[token_type_ids]
    x = we + positional_enc[None, :, :] + te
    u = x.mean(-1, keepdims=True)
    s = ((x - u) ** 2).mean(-1, keepdims=True)
    ref = ln_gamma * ((x - u) / jnp.sqrt(s + LN_EPS)) + ln_beta

    assert out.shape == (B, S, H)
    assert out.dtype == jnp.float32
    assert jnp.allclose(out, ref, atol=1e-5, rtol=1e-5)
    print("KERNEL_OK")
</pallas_src>

<mosaic_0001>
module attributes {stable_mosaic.version = 11 : i64} {
  func.func @_bert_embeddings_kernel(%arg0: i32, %arg1: memref<32xi32, #tpu.memory_space<smem>>, %arg2: memref<8x128xf32, #tpu.memory_space<vmem>>, %arg3: memref<8x1xi32, #tpu.memory_space<vmem>>, %arg4: memref<96x128xf32, #tpu.memory_space<any>>, %arg5: memref<2x128xf32, #tpu.memory_space<vmem>>, %arg6: memref<1x128xf32, #tpu.memory_space<vmem>>, %arg7: memref<1x128xf32, #tpu.memory_space<vmem>>, %arg8: memref<8x128xf32, #tpu.memory_space<vmem>>, %arg9: memref<2x8x128xf32, #tpu.memory_space<vmem>>, %arg10: memref<2x!tpu.dma_semaphore, #tpu.memory_space<semaphore_mem>>) attributes {dimension_semantics = [#tpu.dimension_semantics<arbitrary>], iteration_bounds = array<i64: 4>, scalar_prefetch = 1 : i64, scratch_operands = 2 : i64, tpu.core_type = #tpu.core_type<tc>, window_params = [{transform_indices = @transform_0, window_bounds = array<i64: 8, 128>}, {transform_indices = @transform_1, window_bounds = array<i64: 8, 1>}, {}, {pipeline_mode = #tpu.pipeline_mode<synchronous>, transform_indices = @transform_3, window_bounds = array<i64: 2, 128>}, {pipeline_mode = #tpu.pipeline_mode<synchronous>, transform_indices = @transform_4, window_bounds = array<i64: 1, 128>}, {pipeline_mode = #tpu.pipeline_mode<synchronous>, transform_indices = @transform_5, window_bounds = array<i64: 1, 128>}, {transform_indices = @transform_6, window_bounds = array<i64: 8, 128>}]} {
    %c2_i32 = arith.constant 2 : i32
    %c0_i32 = arith.constant 0 : i32
    %0 = arith.cmpi eq, %c2_i32, %c0_i32 : i32
    %c1_i32 = arith.constant 1 : i32
    %1 = arith.select %0, %c1_i32, %c2_i32 : i32
    %2 = arith.remsi %arg0, %1 : i32
    %c0_i32_0 = arith.constant 0 : i32
    %3 = arith.cmpi ne, %2, %c0_i32_0 : i32
    %c0_i32_1 = arith.constant 0 : i32
    %4 = arith.cmpi slt, %2, %c0_i32_1 : i32
    %c0_i32_2 = arith.constant 0 : i32
    %5 = arith.cmpi slt, %1, %c0_i32_2 : i32
    %6 = arith.xori %4, %5 : i1
    %7 = arith.andi %6, %3 : i1
    %8 = arith.addi %2, %1 : i32
    %9 = arith.select %7, %8, %2 : i32
    %c0_i32_3 = arith.constant 0 : i32
    %10 = arith.cmpi eq, %arg0, %c0_i32_3 : i32
    %11 = arith.extui %10 : i1 to i32
    %c0_i32_4 = arith.constant 0 : i32
    %12 = arith.cmpi ne, %11, %c0_i32_4 : i32
    scf.if %12 {
      %c0_i32_30 = arith.constant 0 : i32
      %c0_i32_31 = arith.constant 0 : i32
      %63 = arith.addi %c0_i32_31, %c0_i32_30 : i32
      %64 = arith.index_cast %63 : i32 to index
      %65 = memref.load %arg1[%64] : memref<32xi32, #tpu.memory_space<smem>>
      %c0_i32_32 = arith.constant 0 : i32
      %c0_i32_33 = arith.constant 0 : i32
      %c0_i32_34 = arith.constant 0 : i32
      %66 = tpu.memref_slice %arg4[%65, %c0_i32_34] : memref<96x128xf32, #tpu.memory_space<any>> -> memref<1x128xf32, #tpu.memory_space<any>>
      %67 = tpu.memref_squeeze %66 : memref<1x128xf32, #tpu.memory_space<any>> -> memref<128xf32, #tpu.memory_space<any>>
      %c0_i32_35 = arith.constant 0 : i32
      %68 = tpu.memref_slice %arg9[%c0_i32_32, %c0_i32_30, %c0_i32_35] : memref<2x8x128xf32, #tpu.memory_space<vmem>> -> memref<1x1x128xf32, #tpu.memory_space<vmem>>
      %69 = tpu.memref_squeeze %68 : memref<1x1x128xf32, #tpu.memory_space<vmem>> -> memref<128xf32, #tpu.memory_space<vmem>>
      %70 = tpu.memref_slice %arg10[%c0_i32_33] : memref<2x!tpu.dma_semaphore, #tpu.memory_space<semaphore_mem>> -> memref<1x!tpu.dma_semaphore, #tpu.memory_space<semaphore_mem>>
      %71 = tpu.memref_squeeze %70 : memref<1x!tpu.dma_semaphore, #tpu.memory_space<semaphore_mem>> -> memref<!tpu.dma_semaphore, #tpu.memory_space<semaphore_mem>>
      tpu.enqueue_dma source(%67 : memref<128xf32, #tpu.memory_space<any>>) target(%69 : memref<128xf32, #tpu.memory_space<vmem>>) target_semaphore(%71 : memref<!tpu.dma_semaphore, #tpu.memory_space<semaphore_mem>>)
      %c1_i32_36 = arith.constant 1 : i32
      %c0_i32_37 = arith.constant 0 : i32
      %72 = arith.addi %c0_i32_37, %c1_i32_36 : i32
      %73 = arith.index_cast %72 : i32 to index
      %74 = memref.load %arg1[%73] : memref<32xi32, #tpu.memory_space<smem>>
      %c0_i32_38 = arith.constant 0 : i32
      %c0_i32_39 = arith.constant 0 : i32
      %c0_i32_40 = arith.constant 0 : i32
      %75 = tpu.memref_slice %arg4[%74, %c0_i32_40] : memref<96x128xf32, #tpu.memory_space<any>> -> memref<1x128xf32, #tpu.memory_space<any>>
      %76 = tpu.memref_squeeze %75 : memref<1x128xf32, #tpu.memory_space<any>> -> memref<128xf32, #tpu.memory_space<any>>
      %c0_i32_41 = arith.constant 0 : i32
      %77 = tpu.memref_slice %arg9[%c0_i32_38, %c1_i32_36, %c0_i32_41] : memref<2x8x128xf32, #tpu.memory_space<vmem>> -> memref<1x1x128xf32, #tpu.memory_space<vmem>>
      %78 = tpu.memref_squeeze %77 : memref<1x1x128xf32, #tpu.memory_space<vmem>> -> memref<128xf32, #tpu.memory_space<vmem>>
      %79 = tpu.memref_slice %arg10[%c0_i32_39] : memref<2x!tpu.dma_semaphore, #tpu.memory_space<semaphore_mem>> -> memref<1x!tpu.dma_semaphore, #tpu.memory_space<semaphore_mem>>
      %80 = tpu.memref_squeeze %79 : memref<1x!tpu.dma_semaphore, #tpu.memory_space<semaphore_mem>> -> memref<!tpu.dma_semaphore, #tpu.memory_space<semaphore_mem>>
      tpu.enqueue_dma source(%76 : memref<128xf32, #tpu.memory_space<any>>) target(%78 : memref<128xf32, #tpu.memory_space<vmem>>) target_semaphore(%80 : memref<!tpu.dma_semaphore, #tpu.memory_space<semaphore_mem>>)
      %c2_i32_42 = arith.constant 2 : i32
      %c0_i32_43 = arith.constant 0 : i32
      %81 = arith.addi %c0_i32_43, %c2_i32_42 : i32
      %82 = arith.index_cast %81 : i32 to index
      %83 = memref.load %arg1[%82] : memref<32xi32, #tpu.memory_space<smem>>
      %c0_i32_44 = arith.constant 0 : i32
      %c0_i32_45 = arith.constant 0 : i32
      %c0_i32_46 = arith.constant 0 : i32
      %84 = tpu.memref_slice %arg4[%83, %c0_i32_46] : memref<96x128xf32, #tpu.memory_space<any>> -> memref<1x128xf32, #tpu.memory_space<any>>
      %85 = tpu.memref_squeeze %84 : memref<1x128xf32, #tpu.memory_space<any>> -> memref<128xf32, #tpu.memory_space<any>>
      %c0_i32_47 = arith.constant 0 : i32
      %86 = tpu.memref_slice %arg9[%c0_i32_44, %c2_i32_42, %c0_i32_47] : memref<2x8x128xf32, #tpu.memory_space<vmem>> -> memref<1x1x128xf32, #tpu.memory_space<vmem>>
      %87 = tpu.memref_squeeze %86 : memref<1x1x128xf32, #tpu.memory_space<vmem>> -> memref<128xf32, #tpu.memory_space<vmem>>
      %88 = tpu.memref_slice %arg10[%c0_i32_45] : memref<2x!tpu.dma_semaphore, #tpu.memory_space<semaphore_mem>> -> memref<1x!tpu.dma_semaphore, #tpu.memory_space<semaphore_mem>>
      %89 = tpu.memref_squeeze %88 : memref<1x!tpu.dma_semaphore, #tpu.memory_space<semaphore_mem>> -> memref<!tpu.dma_semaphore, #tpu.memory_space<semaphore_mem>>
      tpu.enqueue_dma source(%85 : memref<128xf32, #tpu.memory_space<any>>) target(%87 : memref<128xf32, #tpu.memory_space<vmem>>) target_semaphore(%89 : memref<!tpu.dma_semaphore, #tpu.memory_space<semaphore_mem>>)
      %c3_i32 = arith.constant 3 : i32
      %c0_i32_48 = arith.constant 0 : i32
      %90 = arith.addi %c0_i32_48, %c3_i32 : i32
      %91 = arith.index_cast %90 : i32 to index
      %92 = memref.load %arg1[%91] : memref<32xi32, #tpu.memory_space<smem>>
      %c0_i32_49 = arith.constant 0 : i32
      %c0_i32_50 = arith.constant 0 : i32
      %c0_i32_51 = arith.constant 0 : i32
      %93 = tpu.memref_slice %arg4[%92, %c0_i32_51] : memref<96x128xf32, #tpu.memory_space<any>> -> memref<1x128xf32, #tpu.memory_space<any>>
      %94 = tpu.memref_squeeze %93 : memref<1x128xf32, #tpu.memory_space<any>> -> memref<128xf32, #tpu.memory_space<any>>
      %c0_i32_52 = arith.constant 0 : i32
      %95 = tpu.memref_slice %arg9[%c0_i32_49, %c3_i32, %c0_i32_52] : memref<2x8x128xf32, #tpu.memory_space<vmem>> -> memref<1x1x128xf32, #tpu.memory_space<vmem>>
      %96 = tpu.memref_squeeze %95 : memref<1x1x128xf32, #tpu.memory_space<vmem>> -> memref<128xf32, #tpu.memory_space<vmem>>
      %97 = tpu.memref_slice %arg10[%c0_i32_50] : memref<2x!tpu.dma_semaphore, #tpu.memory_space<semaphore_mem>> -> memref<1x!tpu.dma_semaphore, #tpu.memory_space<semaphore_mem>>
      %98 = tpu.memref_squeeze %97 : memref<1x!tpu.dma_semaphore, #tpu.memory_space<semaphore_mem>> -> memref<!tpu.dma_semaphore, #tpu.memory_space<semaphore_mem>>
      tpu.enqueue_dma source(%94 : memref<128xf32, #tpu.memory_space<any>>) target(%96 : memref<128xf32, #tpu.memory_space<vmem>>) target_semaphore(%98 : memref<!tpu.dma_semaphore, #tpu.memory_space<semaphore_mem>>)
      %c4_i32_53 = arith.constant 4 : i32
      %c0_i32_54 = arith.constant 0 : i32
      %99 = arith.addi %c0_i32_54, %c4_i32_53 : i32
      %100 = arith.index_cast %99 : i32 to index
      %101 = memref.load %arg1[%100] : memref<32xi32, #tpu.memory_space<smem>>
      %c0_i32_55 = arith.constant 0 : i32
      %c0_i32_56 = arith.constant 0 : i32
      %c0_i32_57 = arith.constant 0 : i32
      %102 = tpu.memref_slice %arg4[%101, %c0_i32_57] : memref<96x128xf32, #tpu.memory_space<any>> -> memref<1x128xf32, #tpu.memory_space<any>>
      %103 = tpu.memref_squeeze %102 : memref<1x128xf32, #tpu.memory_space<any>> -> memref<128xf32, #tpu.memory_space<any>>
      %c0_i32_58 = arith.constant 0 : i32
      %104 = tpu.memref_slice %arg9[%c0_i32_55, %c4_i32_53, %c0_i32_58] : memref<2x8x128xf32, #tpu.memory_space<vmem>> -> memref<1x1x128xf32, #tpu.memory_space<vmem>>
      %105 = tpu.memref_squeeze %104 : memref<1x1x128xf32, #tpu.memory_space<vmem>> -> memref<128xf32, #tpu.memory_space<vmem>>
      %106 = tpu.memref_slice %arg10[%c0_i32_56] : memref<2x!tpu.dma_semaphore, #tpu.memory_space<semaphore_mem>> -> memref<1x!tpu.dma_semaphore, #tpu.memory_space<semaphore_mem>>
      %107 = tpu.memref_squeeze %106 : memref<1x!tpu.dma_semaphore, #tpu.memory_space<semaphore_mem>> -> memref<!tpu.dma_semaphore, #tpu.memory_space<semaphore_mem>>
      tpu.enqueue_dma source(%103 : memref<128xf32, #tpu.memory_space<any>>) target(%105 : memref<128xf32, #tpu.memory_space<vmem>>) target_semaphore(%107 : memref<!tpu.dma_semaphore, #tpu.memory_space<semaphore_mem>>)
      %c5_i32 = arith.constant 5 : i32
      %c0_i32_59 = arith.constant 0 : i32
      %108 = arith.addi %c0_i32_59, %c5_i32 : i32
      %109 = arith.index_cast %108 : i32 to index
      %110 = memref.load %arg1[%109] : memref<32xi32, #tpu.memory_space<smem>>
      %c0_i32_60 = arith.constant 0 : i32
      %c0_i32_61 = arith.constant 0 : i32
      %c0_i32_62 = arith.constant 0 : i32
      %111 = tpu.memref_slice %arg4[%110, %c0_i32_62] : memref<96x128xf32, #tpu.memory_space<any>> -> memref<1x128xf32, #tpu.memory_space<any>>
      %112 = tpu.memref_squeeze %111 : memref<1x128xf32, #tpu.memory_space<any>> -> memref<128xf32, #tpu.memory_space<any>>
      %c0_i32_63 = arith.constant 0 : i32
      %113 = tpu.memref_slice %arg9[%c0_i32_60, %c5_i32, %c0_i32_63] : memref<2x8x128xf32, #tpu.memory_space<vmem>> -> memref<1x1x128xf32, #tpu.memory_space<vmem>>
      %114 = tpu.memref_squeeze %113 : memref<1x1x128xf32, #tpu.memory_space<vmem>> -> memref<128xf32, #tpu.memory_space<vmem>>
      %115 = tpu.memref_slice %arg10[%c0_i32_61] : memref<2x!tpu.dma_semaphore, #tpu.memory_space<semaphore_mem>> -> memref<1x!tpu.dma_semaphore, #tpu.memory_space<semaphore_mem>>
      %116 = tpu.memref_squeeze %115 : memref<1x!tpu.dma_semaphore, #tpu.memory_space<semaphore_mem>> -> memref<!tpu.dma_semaphore, #tpu.memory_space<semaphore_mem>>
      tpu.enqueue_dma source(%112 : memref<128xf32, #tpu.memory_space<any>>) target(%114 : memref<128xf32, #tpu.memory_space<vmem>>) target_semaphore(%116 : memref<!tpu.dma_semaphore, #tpu.memory_space<semaphore_mem>>)
      %c6_i32 = arith.constant 6 : i32
      %c0_i32_64 = arith.constant 0 : i32
      %117 = arith.addi %c0_i32_64, %c6_i32 : i32
      %118 = arith.index_cast %117 : i32 to index
      %119 = memref.load %arg1[%118] : memref<32xi32, #tpu.memory_space<smem>>
      %c0_i32_65 = arith.constant 0 : i32
      %c0_i32_66 = arith.constant 0 : i32
      %c0_i32_67 = arith.constant 0 : i32
      %120 = tpu.memref_slice %arg4[%119, %c0_i32_67] : memref<96x128xf32, #tpu.memory_space<any>> -> memref<1x128xf32, #tpu.memory_space<any>>
      %121 = tpu.memref_squeeze %120 : memref<1x128xf32, #tpu.memory_space<any>> -> memref<128xf32, #tpu.memory_space<any>>
      %c0_i32_68 = arith.constant 0 : i32
      %122 = tpu.memref_slice %arg9[%c0_i32_65, %c6_i32, %c0_i32_68] : memref<2x8x128xf32, #tpu.memory_space<vmem>> -> memref<1x1x128xf32, #tpu.memory_space<vmem>>
      %123 = tpu.memref_squeeze %122 : memref<1x1x128xf32, #tpu.memory_space<vmem>> -> memref<128xf32, #tpu.memory_space<vmem>>
      %124 = tpu.memref_slice %arg10[%c0_i32_66] : memref<2x!tpu.dma_semaphore, #tpu.memory_space<semaphore_mem>> -> memref<1x!tpu.dma_semaphore, #tpu.memory_space<semaphore_mem>>
      %125 = tpu.memref_squeeze %124 : memref<1x!tpu.dma_semaphore, #tpu.memory_space<semaphore_mem>> -> memref<!tpu.dma_semaphore, #tpu.memory_space<semaphore_mem>>
      tpu.enqueue_dma source(%121 : memref<128xf32, #tpu.memory_space<any>>) target(%123 : memref<128xf32, #tpu.memory_space<vmem>>) target_semaphore(%125 : memref<!tpu.dma_semaphore, #tpu.memory_space<semaphore_mem>>)
      %c7_i32 = arith.constant 7 : i32
      %c0_i32_69 = arith.constant 0 : i32
      %126 = arith.addi %c0_i32_69, %c7_i32 : i32
      %127 = arith.index_cast %126 : i32 to index
      %128 = memref.load %arg1[%127] : memref<32xi32, #tpu.memory_space<smem>>
      %c0_i32_70 = arith.constant 0 : i32
      %c0_i32_71 = arith.constant 0 : i32
      %c0_i32_72 = arith.constant 0 : i32
      %129 = tpu.memref_slice %arg4[%128, %c0_i32_72] : memref<96x128xf32, #tpu.memory_space<any>> -> memref<1x128xf32, #tpu.memory_space<any>>
      %130 = tpu.memref_squeeze %129 : memref<1x128xf32, #tpu.memory_space<any>> -> memref<128xf32, #tpu.memory_space<any>>
      %c0_i32_73 = arith.constant 0 : i32
      %131 = tpu.memref_slice %arg9[%c0_i32_70, %c7_i32, %c0_i32_73] : memref<2x8x128xf32, #tpu.memory_space<vmem>> -> memref<1x1x128xf32, #tpu.memory_space<vmem>>
      %132 = tpu.memref_squeeze %131 : memref<1x1x128xf32, #tpu.memory_space<vmem>> -> memref<128xf32, #tpu.memory_space<vmem>>
      %133 = tpu.memref_slice %arg10[%c0_i32_71] : memref<2x!tpu.dma_semaphore, #tpu.memory_space<semaphore_mem>> -> memref<1x!tpu.dma_semaphore, #tpu.memory_space<semaphore_mem>>
      %134 = tpu.memref_squeeze %133 : memref<1x!tpu.dma_semaphore, #tpu.memory_space<semaphore_mem>> -> memref<!tpu.dma_semaphore, #tpu.memory_space<semaphore_mem>>
      tpu.enqueue_dma source(%130 : memref<128xf32, #tpu.memory_space<any>>) target(%132 : memref<128xf32, #tpu.memory_space<vmem>>) target_semaphore(%134 : memref<!tpu.dma_semaphore, #tpu.memory_space<semaphore_mem>>)
      %c8_i32 = arith.constant 8 : i32
    } else {
    }
    %c1_i32_5 = arith.constant 1 : i32
    %13 = arith.addi %arg0, %c1_i32_5 : i32
    %c4_i32 = arith.constant 4 : i32
    %14 = arith.cmpi slt, %13, %c4_i32 : i32
    %15 = arith.extui %14 : i1 to i32
    %c0_i32_6 = arith.constant 0 : i32
    %16 = arith.cmpi ne, %15, %c0_i32_6 : i32
    scf.if %16 {
      %c1_i32_30 = arith.constant 1 : i32
      %63 = arith.addi %arg0, %c1_i32_30 : i32
      %c1_i32_31 = arith.constant 1 : i32
      %64 = arith.subi %c1_i32_31, %9 : i32
      %c8_i32 = arith.constant 8 : i32
      %65 = arith.muli %63, %c8_i32 : i32
      %c0_i32_32 = arith.constant 0 : i32
      %66 = arith.addi %65, %c0_i32_32 : i32
      %67 = arith.index_cast %66 : i32 to index
      %68 = memref.load %arg1[%67] : memref<32xi32, #tpu.memory_space<smem>>
      %c0_i32_33 = arith.constant 0 : i32
      %69 = tpu.memref_slice %arg4[%68, %c0_i32_33] : memref<96x128xf32, #tpu.memory_space<any>> -> memref<1x128xf32, #tpu.memory_space<any>>
      %70 = tpu.memref_squeeze %69 : memref<1x128xf32, #tpu.memory_space<any>> -> memref<128xf32, #tpu.memory_space<any>>
      %c0_i32_34 = arith.constant 0 : i32
      %71 = tpu.memref_slice %arg9[%64, %c0_i32_32, %c0_i32_34] : memref<2x8x128xf32, #tpu.memory_space<vmem>> -> memref<1x1x128xf32, #tpu.memory_space<vmem>>
      %72 = tpu.memref_squeeze %71 : memref<1x1x128xf32, #tpu.memory_space<vmem>> -> memref<128xf32, #tpu.memory_space<vmem>>
      %73 = tpu.memref_slice %arg10[%64] : memref<2x!tpu.dma_semaphore, #tpu.memory_space<semaphore_mem>> -> memref<1x!tpu.dma_semaphore, #tpu.memory_space<semaphore_mem>>
      %74 = tpu.memref_squeeze %73 : memref<1x!tpu.dma_semaphore, #tpu.memory_space<semaphore_mem>> -> memref<!tpu.dma_semaphore, #tpu.memory_space<semaphore_mem>>
      tpu.enqueue_dma source(%70 : memref<128xf32, #tpu.memory_space<any>>) target(%72 : memref<128xf32, #tpu.memory_space<vmem>>) target_semaphore(%74 : memref<!tpu.dma_semaphore, #tpu.memory_space<semaphore_mem>>)
      %c1_i32_35 = arith.constant 1 : i32
      %75 = arith.addi %65, %c1_i32_35 : i32
      %76 = arith.index_cast %75 : i32 to index
      %77 = memref.load %arg1[%76] : memref<32xi32, #tpu.memory_space<smem>>
      %c0_i32_36 = arith.constant 0 : i32
      %78 = tpu.memref_slice %arg4[%77, %c0_i32_36] : memref<96x128xf32, #tpu.memory_space<any>> -> memref<1x128xf32, #tpu.memory_space<any>>
      %79 = tpu.memref_squeeze %78 : memref<1x128xf32, #tpu.memory_space<any>> -> memref<128xf32, #tpu.memory_space<any>>
      %c0_i32_37 = arith.constant 0 : i32
      %80 = tpu.memref_slice %arg9[%64, %c1_i32_35, %c0_i32_37] : memref<2x8x128xf32, #tpu.memory_space<vmem>> -> memref<1x1x128xf32, #tpu.memory_space<vmem>>
      %81 = tpu.memref_squeeze %80 : memref<1x1x128xf32, #tpu.memory_space<vmem>> -> memref<128xf32, #tpu.memory_space<vmem>>
      %82 = tpu.memref_slice %arg10[%64] : memref<2x!tpu.dma_semaphore, #tpu.memory_space<semaphore_mem>> -> memref<1x!tpu.dma_semaphore, #tpu.memory_space<semaphore_mem>>
      %83 = tpu.memref_squeeze %82 : memref<1x!tpu.dma_semaphore, #tpu.memory_space<semaphore_mem>> -> memref<!tpu.dma_semaphore, #tpu.memory_space<semaphore_mem>>
      tpu.enqueue_dma source(%79 : memref<128xf32, #tpu.memory_space<any>>) target(%81 : memref<128xf32, #tpu.memory_space<vmem>>) target_semaphore(%83 : memref<!tpu.dma_semaphore, #tpu.memory_space<semaphore_mem>>)
      %c2_i32_38 = arith.constant 2 : i32
      %84 = arith.addi %65, %c2_i32_38 : i32
      %85 = arith.index_cast %84 : i32 to index
      %86 = memref.load %arg1[%85] : memref<32xi32, #tpu.memory_space<smem>>
      %c0_i32_39 = arith.constant 0 : i32
      %87 = tpu.memref_slice %arg4[%86, %c0_i32_39] : memref<96x128xf32, #tpu.memory_space<any>> -> memref<1x128xf32, #tpu.memory_space<any>>
      %88 = tpu.memref_squeeze %87 : memref<1x128xf32, #tpu.memory_space<any>> -> memref<128xf32, #tpu.memory_space<any>>
      %c0_i32_40 = arith.constant 0 : i32
      %89 = tpu.memref_slice %arg9[%64, %c2_i32_38, %c0_i32_40] : memref<2x8x128xf32, #tpu.memory_space<vmem>> -> memref<1x1x128xf32, #tpu.memory_space<vmem>>
      %90 = tpu.memref_squeeze %89 : memref<1x1x128xf32, #tpu.memory_space<vmem>> -> memref<128xf32, #tpu.memory_space<vmem>>
      %91 = tpu.memref_slice %arg10[%64] : memref<2x!tpu.dma_semaphore, #tpu.memory_space<semaphore_mem>> -> memref<1x!tpu.dma_semaphore, #tpu.memory_space<semaphore_mem>>
      %92 = tpu.memref_squeeze %91 : memref<1x!tpu.dma_semaphore, #tpu.memory_space<semaphore_mem>> -> memref<!tpu.dma_semaphore, #tpu.memory_space<semaphore_mem>>
      tpu.enqueue_dma source(%88 : memref<128xf32, #tpu.memory_space<any>>) target(%90 : memref<128xf32, #tpu.memory_space<vmem>>) target_semaphore(%92 : memref<!tpu.dma_semaphore, #tpu.memory_space<semaphore_mem>>)
      %c3_i32 = arith.constant 3 : i32
      %93 = arith.addi %65, %c3_i32 : i32
      %94 = arith.index_cast %93 : i32 to index
      %95 = memref.load %arg1[%94] : memref<32xi32, #tpu.memory_space<smem>>
      %c0_i32_41 = arith.constant 0 : i32
      %96 = tpu.memref_slice %arg4[%95, %c0_i32_41] : memref<96x128xf32, #tpu.memory_space<any>> -> memref<1x128xf32, #tpu.memory_space<any>>
      %97 = tpu.memref_squeeze %96 : memref<1x128xf32, #tpu.memory_space<any>> -> memref<128xf32, #tpu.memory_space<any>>
      %c0_i32_42 = arith.constant 0 : i32
      %98 = tpu.memref_slice %arg9[%64, %c3_i32, %c0_i32_42] : memref<2x8x128xf32, #tpu.memory_space<vmem>> -> memref<1x1x128xf32, #tpu.memory_space<vmem>>
      %99 = tpu.memref_squeeze %98 : memref<1x1x128xf32, #tpu.memory_space<vmem>> -> memref<128xf32, #tpu.memory_space<vmem>>
      %100 = tpu.memref_slice %arg10[%64] : memref<2x!tpu.dma_semaphore, #tpu.memory_space<semaphore_mem>> -> memref<1x!tpu.dma_semaphore, #tpu.memory_space<semaphore_mem>>
      %101 = tpu.memref_squeeze %100 : memref<1x!tpu.dma_semaphore, #tpu.memory_space<semaphore_mem>> -> memref<!tpu.dma_semaphore, #tpu.memory_space<semaphore_mem>>
      tpu.enqueue_dma source(%97 : memref<128xf32, #tpu.memory_space<any>>) target(%99 : memref<128xf32, #tpu.memory_space<vmem>>) target_semaphore(%101 : memref<!tpu.dma_semaphore, #tpu.memory_space<semaphore_mem>>)
      %c4_i32_43 = arith.constant 4 : i32
      %102 = arith.addi %65, %c4_i32_43 : i32
      %103 = arith.index_cast %102 : i32 to index
      %104 = memref.load %arg1[%103] : memref<32xi32, #tpu.memory_space<smem>>
      %c0_i32_44 = arith.constant 0 : i32
      %105 = tpu.memref_slice %arg4[%104, %c0_i32_44] : memref<96x128xf32, #tpu.memory_space<any>> -> memref<1x128xf32, #tpu.memory_space<any>>
      %106 = tpu.memref_squeeze %105 : memref<1x128xf32, #tpu.memory_space<any>> -> memref<128xf32, #tpu.memory_space<any>>
      %c0_i32_45 = arith.constant 0 : i32
      %107 = tpu.memref_slice %arg9[%64, %c4_i32_43, %c0_i32_45] : memref<2x8x128xf32, #tpu.memory_space<vmem>> -> memref<1x1x128xf32, #tpu.memory_space<vmem>>
      %108 = tpu.memref_squeeze %107 : memref<1x1x128xf32, #tpu.memory_space<vmem>> -> memref<128xf32, #tpu.memory_space<vmem>>
      %109 = tpu.memref_slice %arg10[%64] : memref<2x!tpu.dma_semaphore, #tpu.memory_space<semaphore_mem>> -> memref<1x!tpu.dma_semaphore, #tpu.memory_space<semaphore_mem>>
      %110 = tpu.memref_squeeze %109 : memref<1x!tpu.dma_semaphore, #tpu.memory_space<semaphore_mem>> -> memref<!tpu.dma_semaphore, #tpu.memory_space<semaphore_mem>>
      tpu.enqueue_dma source(%106 : memref<128xf32, #tpu.memory_space<any>>) target(%108 : memref<128xf32, #tpu.memory_space<vmem>>) target_semaphore(%110 : memref<!tpu.dma_semaphore, #tpu.memory_space<semaphore_mem>>)
      %c5_i32 = arith.constant 5 : i32
      %111 = arith.addi %65, %c5_i32 : i32
      %112 = arith.index_cast %111 : i32 to index
      %113 = memref.load %arg1[%112] : memref<32xi32, #tpu.memory_space<smem>>
      %c0_i32_46 = arith.constant 0 : i32
      %114 = tpu.memref_slice %arg4[%113, %c0_i32_46] : memref<96x128xf32, #tpu.memory_space<any>> -> memref<1x128xf32, #tpu.memory_space<any>>
      %115 = tpu.memref_squeeze %114 : memref<1x128xf32, #tpu.memory_space<any>> -> memref<128xf32, #tpu.memory_space<any>>
      %c0_i32_47 = arith.constant 0 : i32
      %116 = tpu.memref_slice %arg9[%64, %c5_i32, %c0_i32_47] : memref<2x8x128xf32, #tpu.memory_space<vmem>> -> memref<1x1x128xf32, #tpu.memory_space<vmem>>
      %117 = tpu.memref_squeeze %116 : memref<1x1x128xf32, #tpu.memory_space<vmem>> -> memref<128xf32, #tpu.memory_space<vmem>>
      %118 = tpu.memref_slice %arg10[%64] : memref<2x!tpu.dma_semaphore, #tpu.memory_space<semaphore_mem>> -> memref<1x!tpu.dma_semaphore, #tpu.memory_space<semaphore_mem>>
      %119 = tpu.memref_squeeze %118 : memref<1x!tpu.dma_semaphore, #tpu.memory_space<semaphore_mem>> -> memref<!tpu.dma_semaphore, #tpu.memory_space<semaphore_mem>>
      tpu.enqueue_dma source(%115 : memref<128xf32, #tpu.memory_space<any>>) target(%117 : memref<128xf32, #tpu.memory_space<vmem>>) target_semaphore(%119 : memref<!tpu.dma_semaphore, #tpu.memory_space<semaphore_mem>>)
      %c6_i32 = arith.constant 6 : i32
      %120 = arith.addi %65, %c6_i32 : i32
      %121 = arith.index_cast %120 : i32 to index
      %122 = memref.load %arg1[%121] : memref<32xi32, #tpu.memory_space<smem>>
      %c0_i32_48 = arith.constant 0 : i32
      %123 = tpu.memref_slice %arg4[%122, %c0_i32_48] : memref<96x128xf32, #tpu.memory_space<any>> -> memref<1x128xf32, #tpu.memory_space<any>>
      %124 = tpu.memref_squeeze %123 : memref<1x128xf32, #tpu.memory_space<any>> -> memref<128xf32, #tpu.memory_space<any>>
      %c0_i32_49 = arith.constant 0 : i32
      %125 = tpu.memref_slice %arg9[%64, %c6_i32, %c0_i32_49] : memref<2x8x128xf32, #tpu.memory_space<vmem>> -> memref<1x1x128xf32, #tpu.memory_space<vmem>>
      %126 = tpu.memref_squeeze %125 : memref<1x1x128xf32, #tpu.memory_space<vmem>> -> memref<128xf32, #tpu.memory_space<vmem>>
      %127 = tpu.memref_slice %arg10[%64] : memref<2x!tpu.dma_semaphore, #tpu.memory_space<semaphore_mem>> -> memref<1x!tpu.dma_semaphore, #tpu.memory_space<semaphore_mem>>
      %128 = tpu.memref_squeeze %127 : memref<1x!tpu.dma_semaphore, #tpu.memory_space<semaphore_mem>> -> memref<!tpu.dma_semaphore, #tpu.memory_space<semaphore_mem>>
      tpu.enqueue_dma source(%124 : memref<128xf32, #tpu.memory_space<any>>) target(%126 : memref<128xf32, #tpu.memory_space<vmem>>) target_semaphore(%128 : memref<!tpu.dma_semaphore, #tpu.memory_space<semaphore_mem>>)
      %c7_i32 = arith.constant 7 : i32
      %129 = arith.addi %65, %c7_i32 : i32
      %130 = arith.index_cast %129 : i32 to index
      %131 = memref.load %arg1[%130] : memref<32xi32, #tpu.memory_space<smem>>
      %c0_i32_50 = arith.constant 0 : i32
      %132 = tpu.memref_slice %arg4[%131, %c0_i32_50] : memref<96x128xf32, #tpu.memory_space<any>> -> memref<1x128xf32, #tpu.memory_space<any>>
      %133 = tpu.memref_squeeze %132 : memref<1x128xf32, #tpu.memory_space<any>> -> memref<128xf32, #tpu.memory_space<any>>
      %c0_i32_51 = arith.constant 0 : i32
      %134 = tpu.memref_slice %arg9[%64, %c7_i32, %c0_i32_51] : memref<2x8x128xf32, #tpu.memory_space<vmem>> -> memref<1x1x128xf32, #tpu.memory_space<vmem>>
      %135 = tpu.memref_squeeze %134 : memref<1x1x128xf32, #tpu.memory_space<vmem>> -> memref<128xf32, #tpu.memory_space<vmem>>
      %136 = tpu.memref_slice %arg10[%64] : memref<2x!tpu.dma_semaphore, #tpu.memory_space<semaphore_mem>> -> memref<1x!tpu.dma_semaphore, #tpu.memory_space<semaphore_mem>>
      %137 = tpu.memref_squeeze %136 : memref<1x!tpu.dma_semaphore, #tpu.memory_space<semaphore_mem>> -> memref<!tpu.dma_semaphore, #tpu.memory_space<semaphore_mem>>
      tpu.enqueue_dma source(%133 : memref<128xf32, #tpu.memory_space<any>>) target(%135 : memref<128xf32, #tpu.memory_space<vmem>>) target_semaphore(%137 : memref<!tpu.dma_semaphore, #tpu.memory_space<semaphore_mem>>)
      %c8_i32_52 = arith.constant 8 : i32
    } else {
    }
    %c0 = arith.constant 0 : index
    %c0_7 = arith.constant 0 : index
    %17 = vector.load %arg3[%c0, %c0_7] : memref<8x1xi32, #tpu.memory_space<vmem>>, vector<8x1xi32>
    %c0_8 = arith.constant 0 : index
    %c0_9 = arith.constant 0 : index
    %18 = vector.load %arg5[%c0_8, %c0_9] : memref<2x128xf32, #tpu.memory_space<vmem>>, vector<1x128xf32>
    %c1 = arith.constant 1 : index
    %c0_10 = arith.constant 0 : index
    %19 = vector.load %arg5[%c1, %c0_10] : memref<2x128xf32, #tpu.memory_space<vmem>>, vector<1x128xf32>
    %c0_i32_11 = arith.constant 0 : i32
    %20 = vector.broadcast %c0_i32_11 : i32 to vector<8x1xi32>
    %21 = arith.cmpi eq, %17, %20 : vector<8x1xi32>
    %22 = vector.shape_cast %21 : vector<8x1xi1> to vector<8x1xi1>
    %23 = vector.broadcast %22 : vector<8x1xi1> to vector<8x128xi1>
    %24 = vector.shape_cast %18 : vector<1x128xf32> to vector<1x128xf32>
    %25 = vector.broadcast %24 : vector<1x128xf32> to vector<8x128xf32>
    %26 = vector.shape_cast %19 : vector<1x128xf32> to vector<1x128xf32>
    %27 = vector.broadcast %26 : vector<1x128xf32> to vector<8x128xf32>
    %28 = arith.select %23, %25, %27 : vector<8x128xi1>, vector<8x128xf32>
    %c0_i32_12 = arith.constant 0 : i32
    %c0_i32_13 = arith.constant 0 : i32
    %29 = tpu.memref_slice %arg4[%c0_i32_12, %c0_i32_13] : memref<96x128xf32, #tpu.memory_space<any>> -> memref<8x128xf32, #tpu.memory_space<any>>
    %c0_i32_14 = arith.constant 0 : i32
    %c0_i32_15 = arith.constant 0 : i32
    %30 = tpu.memref_slice %arg9[%9, %c0_i32_14, %c0_i32_15] : memref<2x8x128xf32, #tpu.memory_space<vmem>> -> memref<1x8x128xf32, #tpu.memory_space<vmem>>
    %31 = tpu.memref_squeeze %30 : memref<1x8x128xf32, #tpu.memory_space<vmem>> -> memref<8x128xf32, #tpu.memory_space<vmem>>
    %32 = tpu.memref_slice %arg10[%9] : memref<2x!tpu.dma_semaphore, #tpu.memory_space<semaphore_mem>> -> memref<1x!tpu.dma_semaphore, #tpu.memory_space<semaphore_mem>>
    %33 = tpu.memref_squeeze %32 : memref<1x!tpu.dma_semaphore, #tpu.memory_space<semaphore_mem>> -> memref<!tpu.dma_semaphore, #tpu.memory_space<semaphore_mem>>
    tpu.wait_dma2 semaphore(%33 : memref<!tpu.dma_semaphore, #tpu.memory_space<semaphore_mem>>) src(%29 : memref<8x128xf32, #tpu.memory_space<any>>) dst(%31 : memref<8x128xf32, #tpu.memory_space<vmem>>)
    %34 = arith.index_cast %9 : i32 to index
    %c0_16 = arith.constant 0 : index
    %c0_17 = arith.constant 0 : index
    %35 = vector.load %arg9[%34, %c0_16, %c0_17] : memref<2x8x128xf32, #tpu.memory_space<vmem>>, vector<1x8x128xf32>
    %36 = vector.shape_cast %35 : vector<1x8x128xf32> to vector<8x128xf32>
    %c0_18 = arith.constant 0 : index
    %c0_19 = arith.constant 0 : index
    %37 = vector.load %arg2[%c0_18, %c0_19] : memref<8x128xf32, #tpu.memory_space<vmem>>, vector<8x128xf32>
    %38 = arith.addf %36, %37 : vector<8x128xf32>
    %39 = arith.addf %38, %28 : vector<8x128xf32>
    %cst = arith.constant dense<0.000000e+00> : vector<8xf32>
    %40 = vector.multi_reduction <add>, %39, %cst [1] : vector<8x128xf32> to vector<8xf32>
    %41 = vector.shape_cast %40 : vector<8xf32> to vector<8x1xf32>
    %cst_20 = arith.constant 1.280000e+02 : f32
    %42 = vector.broadcast %cst_20 : f32 to vector<8x1xf32>
    %43 = arith.divf %41, %42 : vector<8x1xf32>
    %44 = vector.broadcast %43 : vector<8x1xf32> to vector<8x128xf32>
    %45 = arith.subf %39, %44 : vector<8x128xf32>
    %46 = arith.mulf %45, %45 : vector<8x128xf32>
    %cst_21 = arith.constant dense<0.000000e+00> : vector<8xf32>
    %47 = vector.multi_reduction <add>, %46, %cst_21 [1] : vector<8x128xf32> to vector<8xf32>
    %48 = vector.shape_cast %47 : vector<8xf32> to vector<8x1xf32>
    %cst_22 = arith.constant 1.280000e+02 : f32
    %49 = vector.broadcast %cst_22 : f32 to vector<8x1xf32>
    %50 = arith.divf %48, %49 : vector<8x1xf32>
    %cst_23 = arith.constant 9.99999996E-13 : f32
    %51 = vector.broadcast %cst_23 : f32 to vector<8x1xf32>
    %52 = arith.addf %50, %51 : vector<8x1xf32>
    %53 = math.rsqrt %52 : vector<8x1xf32>
    %54 = vector.broadcast %53 : vector<8x1xf32> to vector<8x128xf32>
    %55 = arith.mulf %45, %54 : vector<8x128xf32>
    %c0_24 = arith.constant 0 : index
    %c0_25 = arith.constant 0 : index
    %56 = vector.load %arg6[%c0_24, %c0_25] : memref<1x128xf32, #tpu.memory_space<vmem>>, vector<1x128xf32>
    %57 = vector.broadcast %56 : vector<1x128xf32> to vector<8x128xf32>
    %58 = arith.mulf %57, %55 : vector<8x128xf32>
    %c0_26 = arith.constant 0 : index
    %c0_27 = arith.constant 0 : index
    %59 = vector.load %arg7[%c0_26, %c0_27] : memref<1x128xf32, #tpu.memory_space<vmem>>, vector<1x128xf32>
    %60 = vector.broadcast %59 : vector<1x128xf32> to vector<8x128xf32>
    %61 = arith.addf %58, %60 : vector<8x128xf32>
    %c0_28 = arith.constant 0 : index
    %c0_29 = arith.constant 0 : index
    %62 = vector.load %arg8[%c0_28, %c0_29] : memref<8x128xf32, #tpu.memory_space<vmem>>, vector<8x128xf32>
    tpu.vector_store %arg8[%c0_28, %c0_29], %61 {strides = array<i32>} : memref<8x128xf32, #tpu.memory_space<vmem>>, vector<8x128xf32>,
    return
  }
  func.func @transform_0(%arg0: i32, %arg1: memref<32xi32, #tpu.memory_space<smem>>) -> (i32, i32) {
    %c2_i32 = arith.constant 2 : i32
    %c0_i32 = arith.constant 0 : i32
    %0 = arith.cmpi eq, %c2_i32, %c0_i32 : i32
    %c1_i32 = arith.constant 1 : i32
    %1 = arith.select %0, %c1_i32, %c2_i32 : i32
    %2 = arith.remsi %arg0, %1 : i32
    %c0_i32_0 = arith.constant 0 : i32
    %3 = arith.cmpi ne, %2, %c0_i32_0 : i32
    %c0_i32_1 = arith.constant 0 : i32
    %4 = arith.cmpi slt, %2, %c0_i32_1 : i32
    %c0_i32_2 = arith.constant 0 : i32
    %5 = arith.cmpi slt, %1, %c0_i32_2 : i32
    %6 = arith.xori %4, %5 : i1
    %7 = arith.andi %6, %3 : i1
    %8 = arith.addi %2, %1 : i32
    %9 = arith.select %7, %8, %2 : i32
    %c0_i32_3 = arith.constant 0 : i32
    %c0_i32_4 = arith.constant 0 : i32
    return %9, %c0_i32_3 : i32, i32
  }
  func.func @transform_1(%arg0: i32, %arg1: memref<32xi32, #tpu.memory_space<smem>>) -> (i32, i32) {
    %c0_i32 = arith.constant 0 : i32
    %c0_i32_0 = arith.constant 0 : i32
    return %arg0, %c0_i32 : i32, i32
  }
  func.func @transform_3(%arg0: i32, %arg1: memref<32xi32, #tpu.memory_space<smem>>) -> (i32, i32) {
    %c0_i32 = arith.constant 0 : i32
    %c0_i32_0 = arith.constant 0 : i32
    %c0_i32_1 = arith.constant 0 : i32
    return %c0_i32, %c0_i32_0 : i32, i32
  }
  func.func @transform_4(%arg0: i32, %arg1: memref<32xi32, #tpu.memory_space<smem>>) -> (i32, i32) {
    %c0_i32 = arith.constant 0 : i32
    %c0_i32_0 = arith.constant 0 : i32
    %c0_i32_1 = arith.constant 0 : i32
    return %c0_i32, %c0_i32_0 : i32, i32
  }
  func.func @transform_5(%arg0: i32, %arg1: memref<32xi32, #tpu.memory_space<smem>>) -> (i32, i32) {
    %c0_i32 = arith.constant 0 : i32
    %c0_i32_0 = arith.constant 0 : i32
    %c0_i32_1 = arith.constant 0 : i32
    return %c0_i32, %c0_i32_0 : i32, i32
  }
  func.func @transform_6(%arg0: i32, %arg1: memref<32xi32, #tpu.memory_space<smem>>) -> (i32, i32) {
    %c0_i32 = arith.constant 0 : i32
    %c0_i32_0 = arith.constant 0 : i32
    return %arg0, %c0_i32 : i32, i32
  }
}

</mosaic_0001>

<bundles_post_ra>
// kernel: tpu_custom_call.1
= control target key start
LH: loop header
LB: loop body
LE: loop exit
PB: predicated region body
PF: predicated region fallthrough
CT: control target
= control target key end

     0   :  { %s2125_s0 = inlined_call_operand.vmem [shape: s32[32], index: 0, kind: input, shape index: {}]   ;;  %s2126_s1 = inlined_call_operand.vmem [shape: f32[16,128], index: 1, kind: input, shape index: {}]   ;;  %s2127_s2 = inlined_call_operand.vmem [shape: s32[32,1], index: 2, kind: input, shape index: {}]   ;;  %s2128_s3 = inlined_call_operand.hbm [shape: f32[96,128], index: 3, kind: input, shape index: {}]   ;;  %s2129_s4 = inlined_call_operand.vmem [shape: f32[2,128], index: 4, kind: input, shape index: {}]   ;;  %s2130_s5 = inlined_call_operand.vmem [shape: f32[1,128], index: 5, kind: input, shape index: {}]   ;;  %s2131_s6 = inlined_call_operand.vmem [shape: f32[1,128], index: 6, kind: input, shape index: {}]   ;;  %s2132_s7 = inlined_call_operand.hbm [shape: f32[32,128], index: 7, kind: output, shape index: {}]  }
   0x1   :  { %2142 = sst [smem:[#allocation59_spill]] %s2126_s1  ;;  %s12_s26 = sshll.u32 %s2125_s0, 4  ;;  %s13_s26 = int_to_ptr.vmem [resolvable:$true] %s12_s26 }
   0x2   :  { %2143 = sst [smem:[#allocation60_spill]] %s2127_s2  ;;  %s975_s27 = scalar_lea.vmem %s13_s26, 16 }
   0x3   :  { %2144 = sst [smem:[#allocation61_spill]] %s2130_s5  ;;  %p976_p0 = scmp.ne.s32.totalorder %s13_s26, %s975_s27 }
   0x4   :  { %2145 = sst [smem:[#allocation62_spill]] %s2131_s6  ;;  %p980_p1 = scmp.lt.s32.totalorder %s13_s26, %s13_s26 }
   0x5   :  { %2146 = sst [smem:[#allocation63_spill]] %s2132_s7  ;;  %p981_p2 = scmp.lt.s32.totalorder %s975_s27, %s975_s27 }
   0x7   :  { %p982_p3 = por %p981_p2, %p980_p1 }
   0x9   :  { %p983_p4 = pnand %p982_p3, %p976_p0 }
   0xb   :  { %986 = shalt.err (!%p983_p4)  }
   0xc   :  { %s1503_s28 = smov [#allocation5]  }
   0xd   :  { %15 = dma.vmem_to_smem %s13_s26, 16, %s1503_s28, [#allocation4] }
   0xe   :  { %1479 = dma.done.wait [#allocation4], 16 }
   0xf   :  { %1480 = vsyncadd [#allocation4], 4294967280 }
  0x10   :  { %17 = sfence }
  0x11   :  { %18 = vsyncpa [#allocation7], 0 }
  0x12   :  { %20 = vsyncpa [#allocation7 + $0x1], 0  ;;  %s1557_s29 = smov 0   ;;  %s1559_s30 = smov 0  }
  0x13   :  { %s1561_s0 = smov 0   ;;  %s1563_s8 = smov 0  }
  0x14 LB: > { %2147 = sst [smem:[#allocation53_spill]] %s1489_s29  ;;  %s1578_s9 = sadd.s32 4294967295, %s1501_s8   ;;  %s1501_s8 = sphi %s1563_s8, %s2170_s8   ;;  %s1497_s0 = sphi %s1561_s0, %s2172_s0   ;;  %s1493_s30 = sphi %s1559_s30, %s2174_s30   ;;  %s1489_s29 = sphi %s1557_s29, %s2173_s29  }
  0x15   : > { %2148 = sst [smem:[#allocation54_spill]] %s1497_s0  ;;  %s821_s10 = sadd.s32 4294967294, %s1501_s8  }
  0x16   : > { %2149 = sst [smem:[#allocation55_spill]] %s1501_s8  ;;  %s1582_s11 = sadd.s32 1, %s1501_s8  }
  0x17   : > { %2150 = sst [smem:[#allocation56_spill]] %s1582_s11  ;;  %s172_s12 = sadd.s32 1, %s1497_s0 }
  0x18   : > { %s169_s13 = ssub.s32 %s1501_s8, %s1582_s11  ;;  %p182_p5 = scmp.ne.s32.totalorder %s1497_s0, %s1493_s30 }
  0x19   : > { %p170_p6 = scmp.eq.s32.totalorder %s169_s13, 0  ;;  %p183_p7 = scmp.eq.s32.totalorder %s1578_s9, 3 }
  0x1a   : > { %p188_p8 = scmp.ne.s32.totalorder %s1493_s30, %s1489_s29  ;;  %p189_p9 = scmp.eq.s32.totalorder %s821_s10, 3 }
  0x1b   : > { %s1593_s14 = scalar_select %p170_p6, %s1497_s0, %s172_s12  }
  0x1c   : > { %p1595_p10 = por %p183_p7, %p182_p5  ;;  %p1599_p11 = por %p189_p9, %p188_p8 }
  0x1d   : > { %2151 = sst [smem:[#allocation57_spill]] %s1593_s14  ;;  %p830_p12 = scmp.ge.s32.totalorder %s1501_s8, 1 }
  0x1e   : > { %s2152_s15 = scalar_select %p1595_p10, 1, 0 }
  0x1f   : > { %s2153_s16 = scalar_select %p1599_p11, 1, 0 }
  0x20   : > { %p254_p13 = scmp.lt.s32.totalorder %s1501_s8, 5 }
  0x21   : > { %2154 = sst [smem:[#allocation58_spill]] %s2153_s16 }
  0x22   : > { %p255_p0 = pnand %p830_p12, %p254_p13 }
  0x23   : > { %p325_p1 = scmp.lt.s32.totalorder (!%p255_p0), %s1578_s9, 3  ;;  %s2133_s17 = sand.u32 (!%p255_p0), 1, %s1493_s30   ;;  %v1504_v0 = vmov (!%p255_p0), 0  }
  0x24   : > { %258 = sbr.rel (%p255_p0) target bundleno = 787 (0x313), region = 40  ;;  %972 = vset.pattern.permute.xlu0 (!%p255_p0), %v1504_v0  ;;  %s1609_s18 = sshll.u32 (!%p255_p0), %s2133_s17, 3 }
  0x25   : > { %p927_p2 = scmp.eq.s32.totalorder (!%p255_p0), %s1578_s9, 0  ;;  %s345_s21 = sld [smem:[#allocation5]] (!%p255_p0) }
  0x26   : > { %s2155_s2 = sld [smem:[#allocation60_spill]] (!%p255_p0)  ;;  %s1505_s25 = smov (!%p255_p0), [#allocation2]  }
  0x27   : > { %s355_s26 = sshll.u32 (!%p255_p0), %s1505_s25, 4  ;;  %s1616_s27 = sld [smem:[#allocation5 + $0x1]] (!%p255_p0)  ;;  %s1618_s26 = int_to_ptr.vmem [resolvable:$true] %s355_s26 }
  0x28   : > { %s1506_s28 = smov (!%p255_p0), [#allocation2 + $0x1]   ;;  %s1620_s12 = sld [smem:[#allocation5 + $0x2]] (!%p255_p0) }
  0x29   : > { %s370_s10 = sshll.u32 (!%p255_p0), %s1506_s28, 4  ;;  %s1622_s10 = int_to_ptr.vmem [resolvable:$true] %s370_s10 }
  0x2b   : > { %s326_s19 = scalar_select %p325_p1, %s1578_s9, 3 }
  0x2c   : > { %s841_s13 = sshll.u32 %s345_s21, 4 }
  0x2d   : > { %s836_s20 = sshll.u32 %s326_s19, 3  ;;  %s1507_s19 = smov [#allocation2 + $0x2]  }
  0x2e   : > { %s328_s24 = scalar_lea.vmem %s2155_s2, %s836_s20  ;;  %s385_s20 = sshll.u32 %s1507_s19, 4  ;;  %s1627_s20 = int_to_ptr.vmem [resolvable:$true] %s385_s20 }
  0x2f   : > { %v607_v1 = vld [vmem:[%s328_s24] sm:$0xff]  ;;  %s347_s24 = scalar_lea.hbm %s2128_s3, %s841_s13  ;;  %s1634_s2 = scalar_lea.hbm %s2128_s3, 1536 }
  0x30   : > { %vm610_vm0 = vcmp.eq.s32.totalorder %v607_v1, 0  ;;  %s987_s25 = scalar_lea.hbm %s347_s24, 16  ;;  %p992_p6 = scmp.lt.u32.totalorder %s347_s24, %s2128_s3 }
  0x31   : > { %v611_v2 = vsel %vm610_vm0, 1, %v1504_v0  ;;  %p988_p3 = scmp.ne.s32.totalorder %s347_s24, %s987_s25  ;;  %p993_p7 = scmp.lt.u32.totalorder %s1634_s2, %s987_s25 }
  0x32   : > { %613 = vperm.xlu0 %972, %v611_v2   ;;  %p995_p9 = scmp.lt.u32.totalorder %s987_s25, %s347_s24 }
  0x33   : > { %p989_p4 = pnand %p988_p3, %p927_p2  ;;  %p994_p8 = por %p993_p7, %p992_p6 }
  0x35   : > { %p990_p5 = pneg %p989_p4  ;;  %p996_p12 = por %p995_p9, %p994_p8 }
  0x37   : > { %p997_p13 = pnand %p996_p12, %p990_p5 }
  0x39   : > { %1000 = shalt.err (!%p997_p13)  }
  0x3a   : > { %s1001_s13 = scalar_lea.vmem %s1618_s26, 16  ;;  %s1645_s17 = scalar_lea.vmem %s1618_s26, 256 }
  0x3b   : > { %p1002_p0 = scmp.ne.s32.totalorder %s1618_s26, %s1001_s13  ;;  %p1008_p4 = scmp.lt.s32.totalorder %s1618_s26, %s1618_s26 }
  0x3c   : > { %p1009_p6 = scmp.lt.s32.totalorder %s1645_s17, %s1001_s13 }
  0x3d   : > { %p1003_p1 = pnand %p1002_p0, %p927_p2 }
  0x3e   : > { %p1010_p7 = por %p1009_p6, %p1008_p4 }
  0x3f   : > { %p1004_p3 = pneg %p1003_p1 }
  0x41   : > { %p1011_p8 = pnand %p1010_p7, %p1004_p3 }
  0x43   : > { %1014 = shalt.err (!%p1011_p8)  }
  0x44   : > { %888 = dma.hbm_to_vmem [thread:$0]  (%p927_p2), %s347_s24, 16, %s1618_s26, [#allocation3] }
  0x45   : > { %s843_s14 = sshll.u32 %s1616_s27, 4  ;;  %s1654_s19 = sld [smem:[#allocation5 + $0x3]] }
  0x46   : > { %s361_s25 = scalar_lea.hbm %s2128_s3, %s843_s14  ;;  %s845_s28 = sshll.u32 %s1620_s12, 4 }
  0x47   : > { %s1015_s21 = scalar_lea.hbm %s361_s25, 16  ;;  %p1020_p13 = scmp.lt.u32.totalorder %s361_s25, %s2128_s3 }
  0x48   : > { %p1016_p5 = scmp.ne.s32.totalorder %s361_s25, %s1015_s21  ;;  %p1021_p0 = scmp.lt.u32.totalorder %s1634_s2, %s1015_s21 }
  0x49   : > { %p1023_p3 = scmp.lt.u32.totalorder %s1015_s21, %s361_s25 }
  0x4a   : > { %p1017_p9 = pnand %p1016_p5, %p927_p2  ;;  %p1022_p1 = por %p1021_p0, %p1020_p13 }
  0x4c   : > { %p1018_p12 = pneg %p1017_p9  ;;  %p1024_p4 = por %p1023_p3, %p1022_p1 }
  0x4e   : > { %p1025_p6 = pnand %p1024_p4, %p1018_p12 }
  0x50   : > { %1028 = shalt.err (!%p1025_p6)  }
  0x51   : > { %s1029_s27 = scalar_lea.vmem %s1622_s10, 16  ;;  %p1036_p9 = scmp.lt.s32.totalorder %s1622_s10, %s1618_s26 }
  0x52   : > { %p1030_p7 = scmp.ne.s32.totalorder %s1622_s10, %s1029_s27  ;;  %p1037_p11 = scmp.lt.s32.totalorder %s1645_s17, %s1029_s27 }
  0x54   : > { %p1031_p8 = pnand %p1030_p7, %p927_p2  ;;  %p1038_p10 = por %p1037_p11, %p1036_p9 }
  0x56   : > { %p1032_p5 = pneg %p1031_p8 }
  0x58   : > { %p1039_p0 = pnand %p1038_p10, %p1032_p5 }
  0x5a   : > { %1042 = shalt.err (!%p1039_p0)  }
  0x5b   : > { %889 = dma.hbm_to_vmem [thread:$0]  (%p927_p2), %s361_s25, 16, %s1622_s10, [#allocation3] }
  0x5c   : > { %s376_s24 = scalar_lea.hbm %s2128_s3, %s845_s28 }
  0x5d   : > { %s1043_s14 = scalar_lea.hbm %s376_s24, 16  ;;  %p1048_p10 = scmp.lt.u32.totalorder %s376_s24, %s2128_s3 }
  0x5e   : > { %p1044_p12 = scmp.ne.s32.totalorder %s376_s24, %s1043_s14  ;;  %p1049_p11 = scmp.lt.u32.totalorder %s1634_s2, %s1043_s14 }
  0x5f   : > { %p1051_p4 = scmp.lt.u32.totalorder %s1043_s14, %s376_s24 }
  0x60   : > { %p1045_p13 = pnand %p1044_p12, %p927_p2  ;;  %p1050_p3 = por %p1049_p11, %p1048_p10 }
  0x62   : > { %p1046_p1 = pneg %p1045_p13  ;;  %p1052_p6 = por %p1051_p4, %p1050_p3 }
  0x64   : > { %p1053_p7 = pnand %p1052_p6, %p1046_p1 }
  0x66   : > { %1056 = shalt.err (!%p1053_p7)  }
  0x67   : > { %s1057_s10 = scalar_lea.vmem %s1627_s20, 16  ;;  %p1064_p0 = scmp.lt.s32.totalorder %s1627_s20, %s1618_s26 }
  0x68   : > { %p1058_p8 = scmp.ne.s32.totalorder %s1627_s20, %s1057_s10  ;;  %p1065_p12 = scmp.lt.s32.totalorder %s1645_s17, %s1057_s10 }
  0x6a   : > { %p1059_p5 = pnand %p1058_p8, %p927_p2  ;;  %p1066_p13 = por %p1065_p12, %p1064_p0 }
  0x6c   : > { %p1060_p9 = pneg %p1059_p5 }
  0x6e   : > { %p1067_p10 = pnand %p1066_p13, %p1060_p9 }
  0x70   : > { %1070 = shalt.err (!%p1067_p10)  }
  0x71   : > { %890 = dma.hbm_to_vmem [thread:$0]  (%p927_p2), %s376_s24, 16, %s1627_s20, [#allocation3] }
  0x72   : > { %s1508_s25 = smov [#allocation2 + $0x3]   ;;  %s1695_s21 = sld [smem:[#allocation5 + $0x4]] }
  0x73   : > { %s400_s28 = sshll.u32 %s1508_s25, 4  ;;  %s847_s13 = sshll.u32 %s1654_s19, 4  ;;  %s401_s28 = int_to_ptr.vmem [resolvable:$true] %s400_s28 }
  0x74   : > { %s391_s12 = scalar_lea.hbm %s2128_s3, %s847_s13 }
  0x75   : > { %s1071_s14 = scalar_lea.hbm %s391_s12, 16  ;;  %p1076_p4 = scmp.lt.u32.totalorder %s391_s12, %s2128_s3 }
  0x76   : > { %p1072_p1 = scmp.ne.s32.totalorder %s391_s12, %s1071_s14  ;;  %p1077_p6 = scmp.lt.u32.totalorder %s1634_s2, %s1071_s14 }
  0x77   : > { %p1079_p8 = scmp.lt.u32.totalorder %s1071_s14, %s391_s12 }
  0x78   : > { %p1073_p11 = pnand %p1072_p1, %p927_p2  ;;  %p1078_p7 = por %p1077_p6, %p1076_p4 }
  0x7a   : > { %p1074_p3 = pneg %p1073_p11  ;;  %p1080_p5 = por %p1079_p8, %p1078_p7 }
  0x7c   : > { %p1081_p9 = pnand %p1080_p5, %p1074_p3 }
  0x7e   : > { %1084 = shalt.err (!%p1081_p9)  }
  0x7f   : > { %s1085_s20 = scalar_lea.vmem %s401_s28, 16  ;;  %p1092_p10 = scmp.lt.s32.totalorder %s401_s28, %s1618_s26 }
  0x80   : > { %p1086_p0 = scmp.ne.s32.totalorder %s401_s28, %s1085_s20  ;;  %p1093_p1 = scmp.lt.s32.totalorder %s1645_s17, %s1085_s20 }
  0x82   : > { %p1087_p12 = pnand %p1086_p0, %p927_p2  ;;  %p1094_p11 = por %p1093_p1, %p1092_p10 }
  0x84   : > { %p1088_p13 = pneg %p1087_p12 }
  0x86   : > { %p1095_p4 = pnand %p1094_p11, %p1088_p13 }
  0x88   : > { %1098 = shalt.err (!%p1095_p4)  }
  0x89   : > { %891 = dma.hbm_to_vmem [thread:$0]  (%p927_p2), %s391_s12, 16, %s401_s28, [#allocation3] }
  0x8a   : > { %s1509_s19 = smov [#allocation2 + $0x4]   ;;  %s1713_s10 = sld [smem:[#allocation5 + $0x5]] }
  0x8b   : > { %s415_s24 = sshll.u32 %s1509_s19, 4  ;;  %s849_s25 = sshll.u32 %s1695_s21, 4  ;;  %s416_s24 = int_to_ptr.vmem [resolvable:$true] %s415_s24 }
  0x8c   : > { %s1510_s13 = smov [#allocation2 + $0x5]   ;;  %s406_s22 = scalar_lea.hbm %s2128_s3, %s849_s25 }
  0x8d   : > { %s430_s27 = sshll.u32 %s1510_s13, 4  ;;  %s1099_s23 = scalar_lea.hbm %s406_s22, 16  ;;  %s1719_s27 = int_to_ptr.vmem [resolvable:$true] %s430_s27 }
  0x8e   : > { %p1100_p3 = scmp.ne.s32.totalorder %s406_s22, %s1099_s23  ;;  %p1104_p8 = scmp.lt.u32.totalorder %s406_s22, %s2128_s3 }
  0x8f   : > { %p1105_p5 = scmp.lt.u32.totalorder %s1634_s2, %s1099_s23  ;;  %p1107_p0 = scmp.lt.u32.totalorder %s1099_s23, %s406_s22 }
  0x90   : > { %p1101_p6 = pnand %p1100_p3, %p927_p2 }
  0x91   : > { %p1106_p9 = por %p1105_p5, %p1104_p8 }
  0x92   : > { %p1102_p7 = pneg %p1101_p6 }
  0x93   : > { %p1108_p12 = por %p1107_p0, %p1106_p9 }
  0x95   : > { %p1109_p13 = pnand %p1108_p12, %p1102_p7 }
  0x97   : > { %1112 = shalt.err (!%p1109_p13)  }
  0x98   : > { %s1113_s21 = scalar_lea.vmem %s416_s24, 16  ;;  %p1120_p4 = scmp.lt.s32.totalorder %s416_s24, %s1618_s26 }
  0x99   : > { %p1114_p10 = scmp.ne.s32.totalorder %s416_s24, %s1113_s21  ;;  %p1121_p3 = scmp.lt.s32.totalorder %s1645_s17, %s1113_s21 }
  0x9b   : > { %p1115_p1 = pnand %p1114_p10, %p927_p2  ;;  %p1122_p6 = por %p1121_p3, %p1120_p4 }
  0x9d   : > { %p1116_p11 = pneg %p1115_p1 }
  0x9f   : > { %p1123_p5 = pnand %p1122_p6, %p1116_p11 }
  0xa1   : > { %1126 = shalt.err (!%p1123_p5)  }
  0xa2   : > { %892 = dma.hbm_to_vmem [thread:$0]  (%p927_p2), %s406_s22, 16, %s416_s24, [#allocation3] }
  0xa3   : > { %s1733_s20 = sld [smem:[#allocation5 + $0x6]]  ;;  %s851_s19 = sshll.u32 %s1713_s10, 4 }
  0xa4   : > { %s1511_s25 = smov [#allocation2 + $0x6]   ;;  %s421_s23 = scalar_lea.hbm %s2128_s3, %s851_s19 }
  0xa5   : > { %s445_s13 = sshll.u32 %s1511_s25, 4  ;;  %s1127_s28 = scalar_lea.hbm %s421_s23, 16  ;;  %s1739_s13 = int_to_ptr.vmem [resolvable:$true] %s445_s13 }
  0xa6   : > { %p1128_p7 = scmp.ne.s32.totalorder %s421_s23, %s1127_s28  ;;  %p1132_p0 = scmp.lt.u32.totalorder %s421_s23, %s2128_s3 }
  0xa7   : > { %p1133_p12 = scmp.lt.u32.totalorder %s1634_s2, %s1127_s28  ;;  %p1135_p10 = scmp.lt.u32.totalorder %s1127_s28, %s421_s23 }
  0xa8   : > { %p1129_p8 = pnand %p1128_p7, %p927_p2 }
  0xa9   : > { %p1134_p13 = por %p1133_p12, %p1132_p0 }
  0xaa   : > { %p1130_p9 = pneg %p1129_p8 }
  0xab   : > { %p1136_p1 = por %p1135_p10, %p1134_p13 }
  0xad   : > { %p1137_p11 = pnand %p1136_p1, %p1130_p9 }
  0xaf   : > { %1140 = shalt.err (!%p1137_p11)  }
  0xb0   : > { %s1141_s24 = scalar_lea.vmem %s1719_s27, 16  ;;  %p1148_p5 = scmp.lt.s32.totalorder %s1719_s27, %s1618_s26 }
  0xb1   : > { %p1142_p4 = scmp.ne.s32.totalorder %s1719_s27, %s1141_s24  ;;  %p1149_p7 = scmp.lt.s32.totalorder %s1645_s17, %s1141_s24 }
  0xb3   : > { %p1143_p3 = pnand %p1142_p4, %p927_p2  ;;  %p1150_p8 = por %p1149_p7, %p1148_p5 }
  0xb5   : > { %p1144_p6 = pneg %p1143_p3 }
  0xb7   : > { %p1151_p0 = pnand %p1150_p8, %p1144_p6 }
  0xb9   : > { %1154 = shalt.err (!%p1151_p0)  }
  0xba   : > { %893 = dma.hbm_to_vmem [thread:$0]  (%p927_p2), %s421_s23, 16, %s1719_s27, [#allocation3] }
  0xbb   : > { %s1757_s10 = sld [smem:[#allocation5 + $0x7]]  ;;  %s1512_s22 = smov [#allocation2 + $0x7]  }
  0xbc   : > { %s460_s19 = sshll.u32 %s1512_s22, 4  ;;  %s853_s25 = sshll.u32 %s1733_s20, 4  ;;  %s1761_s19 = int_to_ptr.vmem [resolvable:$true] %s460_s19 }
  0xbd   : > { %s436_s28 = scalar_lea.hbm %s2128_s3, %s853_s25  ;;  %s298_s12 = ssub.s32 0, %s1578_s9 }
  0xbe   : > { %s1155_s21 = scalar_lea.hbm %s436_s28, 16  ;;  %p1160_p1 = scmp.lt.u32.totalorder %s436_s28, %s2128_s3 }
  0xbf   : > { %p1156_p12 = scmp.ne.s32.totalorder %s436_s28, %s1155_s21  ;;  %p1161_p11 = scmp.lt.u32.totalorder %s1634_s2, %s1155_s21 }
  0xc0   : > { %p1163_p3 = scmp.lt.u32.totalorder %s1155_s21, %s436_s28 }
  0xc1   : > { %p1157_p13 = pnand %p1156_p12, %p927_p2  ;;  %p1162_p4 = por %p1161_p11, %p1160_p1 }
  0xc3   : > { %p1158_p10 = pneg %p1157_p13  ;;  %p1164_p6 = por %p1163_p3, %p1162_p4 }
  0xc5   : > { %p1165_p5 = pnand %p1164_p6, %p1158_p10 }
  0xc7   : > { %1168 = shalt.err (!%p1165_p5)  }
  0xc8   : > { %s1169_s20 = scalar_lea.vmem %s1739_s13, 16  ;;  %p1176_p12 = scmp.lt.s32.totalorder %s1739_s13, %s1618_s26 }
  0xc9   : > { %p1170_p7 = scmp.ne.s32.totalorder %s1739_s13, %s1169_s20  ;;  %p1177_p13 = scmp.lt.s32.totalorder %s1645_s17, %s1169_s20 }
  0xcb   : > { %p1171_p8 = pnand %p1170_p7, %p927_p2  ;;  %p1178_p9 = por %p1177_p13, %p1176_p12 }
  0xcd   : > { %p1172_p0 = pneg %p1171_p8 }
  0xcf   : > { %p1179_p1 = pnand %p1178_p9, %p1172_p0 }
  0xd1   : > { %1182 = shalt.err (!%p1179_p1)  }
  0xd2   : > { %894 = dma.hbm_to_vmem [thread:$0]  (%p927_p2), %s436_s28, 16, %s1739_s13, [#allocation3] }
  0xd3   : > { %s832_s23 = smin.u32 %s1578_s9, %s298_s12  ;;  %s464_s22 = sadd.s32 1, %s1578_s9 }
  0xd4   : > { %s855_s25 = sshll.u32 %s1757_s10, 4  ;;  %s300_s0 = sand.u32 1, %s832_s23  }
  0xd5   : > { %s451_s24 = scalar_lea.hbm %s2128_s3, %s855_s25  ;;  %s301_s27 = ssub.s32 0, %s300_s0 }
  0xd6   : > { %s1183_s20 = scalar_lea.hbm %s451_s24, 16  ;;  %p1188_p4 = scmp.lt.u32.totalorder %s451_s24, %s2128_s3 }
  0xd7   : > { %p1184_p9 = scmp.ne.s32.totalorder %s451_s24, %s1183_s20  ;;  %p1189_p3 = scmp.lt.u32.totalorder %s1634_s2, %s1183_s20 }
  0xd8   : > { %p1191_p5 = scmp.lt.u32.totalorder %s1183_s20, %s451_s24 }
  0xd9   : > { %p1185_p10 = pnand %p1184_p9, %p927_p2  ;;  %p1190_p6 = por %p1189_p3, %p1188_p4 }
  0xdb   : > { %p1186_p11 = pneg %p1185_p10  ;;  %p1192_p7 = por %p1191_p5, %p1190_p6 }
  0xdd   : > { %p1193_p8 = pnand %p1192_p7, %p1186_p11 }
  0xdf   : > { %1196 = shalt.err (!%p1193_p8)  }
  0xe0   : > { %s1197_s13 = scalar_lea.vmem %s1761_s19, 16  ;;  %p1204_p1 = scmp.lt.s32.totalorder %s1761_s19, %s1618_s26 }
  0xe1   : > { %p1198_p0 = scmp.ne.s32.totalorder %s1761_s19, %s1197_s13  ;;  %p1205_p9 = scmp.lt.s32.totalorder %s1645_s17, %s1197_s13 }
  0xe3   : > { %p1199_p12 = pnand %p1198_p0, %p927_p2  ;;  %p1206_p10 = por %p1205_p9, %p1204_p1 }
  0xe5   : > { %p1200_p13 = pneg %p1199_p12 }
  0xe7   : > { %p1207_p3 = pnand %p1206_p10, %p1200_p13 }
  0xe9   : > { %1210 = shalt.err (!%p1207_p3)  }
  0xea   : > { %895 = dma.hbm_to_vmem [thread:$0]  (%p927_p2), %s451_s24, 16, %s1761_s19, [#allocation3] }
  0xeb   : > { %p2156_p11 = scmp.lt.s32.totalorder %s1578_s9, 0  ;;  %p1807_p6 = scmp.lt.s32.totalorder %s464_s22, 4 }
  0xec   : > { %s885_s10 = sshll.u32 %s1578_s9, 3  ;;  %s2158_s1 = sld [smem:[#allocation59_spill]] }
  0xed   : > { %s2176_s27 = smov (!%p2156_p11, %s301_s27), %s300_s0  ;;  %s1814_s28 = sadd.s32 8, %s885_s10 }
  0xee   : > { %p834_p4 = scmp.lt.s32.totalorder %s2176_s27, 0  ;;  %s307_s11 = sadd.s32 2, %s2176_s27 }
  0xef   : > { %s897_s12 = scalar_select %p1807_p6, [#allocation5], [#allocation42] }
  0xf0   : > { %s2178_s11 = smov (!%p834_p4, %s307_s11), %s2176_s27  ;;  %s488_s29 = sadd.s32 1, %s1814_s28 }
  0xf1   : > { %p309_p2 = scmp.lt.s32.totalorder %s2178_s11, 1  ;;  %s469_s19 = ssub.s32 1, %s2178_s11 }
  0xf2   : > { %s898_s22 = scalar_select %p1807_p6, %s1814_s28, 0 }
  0xf3   : > { %s310_s23 = scalar_select %p309_p2, %s2178_s11, 1 }
  0xf4   : > { %s859_s0 = sshll.u32 %s469_s19, 3  ;;  %s471_s27 = sld [smem:[%s897_s12 + %s898_s22]] }
  0xf5   : > { %s835_s25 = sshll.u32 %s310_s23, 3  ;;  %s1829_s20 = scalar_lea.vmem [#allocation2], %s859_s0 }
  0xf6   : > { %s1827_s24 = scalar_lea.vmem %s2158_s1, %s835_s25  ;;  %s484_s13 = sshll.u32 %s1829_s20, 4  ;;  %s1833_s13 = int_to_ptr.vmem [resolvable:$true] %s484_s13 }
  0xf7   : > { %s900_s23 = scalar_select %p1807_p6, [#allocation5], [#allocation43] }
  0xf8   : > { %s752_s7 = scalar_lea.vmem %s1829_s20, 1 [#allocation2]  ;;  %s1842_s12 = scalar_lea.sflag [#allocation3], %s469_s19 }
  0xf9   : > { %s501_s21 = sshll.u32 %s752_s7, 4  ;;  %s1865_s21 = int_to_ptr.vmem [resolvable:$true] %s501_s21 }
  0xfa   : > { %s858_s8 = sshll.u32 %s471_s27, 4 }
  0xfb   : > { %s473_s25 = scalar_lea.hbm %s2128_s3, %s858_s8 }
  0xfc   : > { %s1211_s22 = scalar_lea.hbm %s473_s25, 16  ;;  %p1216_p0 = scmp.lt.u32.totalorder %s473_s25, %s2128_s3 }
  0xfd   : > { %p1212_p5 = scmp.ne.s32.totalorder %s473_s25, %s1211_s22  ;;  %p1217_p12 = scmp.lt.u32.totalorder %s1634_s2, %s1211_s22 }
  0xfe   : > { %p1219_p1 = scmp.lt.u32.totalorder %s1211_s22, %s473_s25 }
  0xff   : > { %p1213_p7 = pnand %p1212_p5, %p1807_p6  ;;  %p1218_p13 = por %p1217_p12, %p1216_p0 }
 0x101   : > { %p1214_p8 = pneg %p1213_p7  ;;  %p1220_p9 = por %p1219_p1, %p1218_p13 }
 0x103   : > { %p1221_p10 = pnand %p1220_p9, %p1214_p8 }
 0x105   : > { %1224 = shalt.err (!%p1221_p10)  }
 0x106   : > { %s1225_s6 = scalar_lea.vmem %s1833_s13, 16  ;;  %p1232_p2 = scmp.lt.s32.totalorder %s1833_s13, %s1618_s26 }
 0x107   : > { %p1226_p3 = scmp.ne.s32.totalorder %s1833_s13, %s1225_s6  ;;  %p1233_p5 = scmp.lt.s32.totalorder %s1645_s17, %s1225_s6 }
 0x109   : > { %p1227_p11 = pnand %p1226_p3, %p1807_p6  ;;  %p1234_p7 = por %p1233_p5, %p1232_p2 }
 0x10b   : > { %p1228_p4 = pneg %p1227_p11 }
 0x10d   : > { %p1235_p0 = pnand %p1234_p7, %p1228_p4 }
 0x10f   : > { %1238 = shalt.err (!%p1235_p0)  }
 0x110   : > { %899 = dma.hbm_to_vmem [thread:$0]  (%p1807_p6), %s473_s25, 16, %s1833_s13, %s1842_s12 }
 0x111   : > { %s2180_s29 = smov (!%p1807_p6, %s488_s29), 0  ;;  %s505_s7 = sadd.s32 2, %s1814_s28 }
 0x112   : > { %s489_s8 = sld [smem:[%s900_s23 + %s2180_s29]]  ;;  %s757_s19 = scalar_lea.vmem %s1829_s20, 2 [#allocation2] }
 0x113   : > { %s903_s27 = scalar_select %p1807_p6, [#allocation5], [#allocation44] }
 0x114   : > { %s2182_s7 = smov (!%p1807_p6, %s505_s7), 0  ;;  %s518_s10 = sshll.u32 %s757_s19, 4  ;;  %s1879_s10 = int_to_ptr.vmem [resolvable:$true] %s518_s10 }
 0x115   : > { %s1877_s22 = sld [smem:[%s903_s27 + %s2182_s7]]  ;;  %s762_s0 = scalar_lea.vmem %s1829_s20, 3 [#allocation2] }
 0x116   : > { %s906_s13 = scalar_select %p1807_p6, [#allocation5], [#allocation45] }
 0x117   : > { %s535_s23 = sshll.u32 %s762_s0, 4  ;;  %s1909_s23 = int_to_ptr.vmem [resolvable:$true] %s535_s23 }
 0x118   : > { %s860_s25 = sshll.u32 %s489_s8, 4 }
 0x119   : > { %s491_s29 = scalar_lea.hbm %s2128_s3, %s860_s25 }
 0x11a   : > { %s1239_s5 = scalar_lea.hbm %s491_s29, 16  ;;  %p1244_p1 = scmp.lt.u32.totalorder %s491_s29, %s2128_s3 }
 0x11b   : > { %p1240_p8 = scmp.ne.s32.totalorder %s491_s29, %s1239_s5  ;;  %p1245_p9 = scmp.lt.u32.totalorder %s1634_s2, %s1239_s5 }
 0x11c   : > { %p1247_p3 = scmp.lt.u32.totalorder %s1239_s5, %s491_s29 }
 0x11d   : > { %p1241_p12 = pnand %p1240_p8, %p1807_p6  ;;  %p1246_p10 = por %p1245_p9, %p1244_p1 }
 0x11f   : > { %p1242_p13 = pneg %p1241_p12  ;;  %p1248_p11 = por %p1247_p3, %p1246_p10 }
 0x121   : > { %p1249_p4 = pnand %p1248_p11, %p1242_p13 }
 0x123   : > { %1252 = shalt.err (!%p1249_p4)  }
 0x124   : > { %s1253_s1 = scalar_lea.vmem %s1865_s21, 16  ;;  %p1260_p0 = scmp.lt.s32.totalorder %s1865_s21, %s1618_s26 }
 0x125   : > { %p1254_p2 = scmp.ne.s32.totalorder %s1865_s21, %s1253_s1  ;;  %p1261_p8 = scmp.lt.s32.totalorder %s1645_s17, %s1253_s1 }
 0x127   : > { %p1255_p5 = pnand %p1254_p2, %p1807_p6  ;;  %p1262_p12 = por %p1261_p8, %p1260_p0 }
 0x129   : > { %p1256_p7 = pneg %p1255_p5 }
 0x12b   : > { %p1263_p1 = pnand %p1262_p12, %p1256_p7 }
 0x12d   : > { %1266 = shalt.err (!%p1263_p1)  }
 0x12e   : > { %902 = dma.hbm_to_vmem [thread:$0]  (%p1807_p6), %s491_s29, 16, %s1865_s21, %s1842_s12 }
 0x12f   : > { %s2159_s5 = sadd.s32 3, %s1814_s28  ;;  %s862_s7 = sshll.u32 %s1877_s22, 4 }
 0x130   : > { %s2184_s5 = smov (!%p1807_p6, %s2159_s5), 0  ;;  %s508_s14 = scalar_lea.hbm %s2128_s3, %s862_s7 }
 0x131   : > { %s1917_s25 = sld [smem:[%s906_s13 + %s2184_s5]]  ;;  %s1267_s0 = scalar_lea.hbm %s508_s14, 16 }
 0x132   : > { %p1268_p13 = scmp.ne.s32.totalorder %s508_s14, %s1267_s0  ;;  %p1272_p3 = scmp.lt.u32.totalorder %s508_s14, %s2128_s3 }
 0x133   : > { %p1273_p11 = scmp.lt.u32.totalorder %s1634_s2, %s1267_s0  ;;  %p1275_p2 = scmp.lt.u32.totalorder %s1267_s0, %s508_s14 }
 0x134   : > { %p1269_p9 = pnand %p1268_p13, %p1807_p6 }
 0x135   : > { %p1274_p4 = por %p1273_p11, %p1272_p3 }
 0x136   : > { %p1270_p10 = pneg %p1269_p9 }
 0x137   : > { %p1276_p5 = por %p1275_p2, %p1274_p4 }
 0x139   : > { %p1277_p7 = pnand %p1276_p5, %p1270_p10 }
 0x13b   : > { %1280 = shalt.err (!%p1277_p7)  }
 0x13c   : > { %s1281_s22 = scalar_lea.vmem %s1879_s10, 16  ;;  %p1288_p1 = scmp.lt.s32.totalorder %s1879_s10, %s1618_s26 }
 0x13d   : > { %p1282_p0 = scmp.ne.s32.totalorder %s1879_s10, %s1281_s22  ;;  %p1289_p13 = scmp.lt.s32.totalorder %s1645_s17, %s1281_s22 }
 0x13f   : > { %p1283_p8 = pnand %p1282_p0, %p1807_p6  ;;  %p1290_p9 = por %p1289_p13, %p1288_p1 }
 0x141   : > { %p1284_p12 = pneg %p1283_p8 }
 0x143   : > { %p1291_p3 = pnand %p1290_p9, %p1284_p12 }
 0x145   : > { %1294 = shalt.err (!%p1291_p3)  }
 0x146   : > { %905 = dma.hbm_to_vmem [thread:$0]  (%p1807_p6), %s508_s14, 16, %s1879_s10, %s1842_s12 }
 0x147   : > { %s539_s13 = sadd.s32 4, %s1814_s28  ;;  %s767_s29 = scalar_lea.vmem %s1829_s20, 4 [#allocation2] }
 0x148   : > { %s909_s19 = scalar_select %p1807_p6, [#allocation5], [#allocation46] }
 0x149   : > { %s2186_s13 = smov (!%p1807_p6, %s539_s13), 0  ;;  %s552_s1 = sshll.u32 %s767_s29, 4  ;;  %s1949_s1 = int_to_ptr.vmem [resolvable:$true] %s552_s1 }
 0x14a   : > { %s556_s5 = sadd.s32 5, %s1814_s28  ;;  %s864_s7 = sshll.u32 %s1917_s25, 4 }
 0x14b   : > { %s1944_s8 = sld [smem:[%s909_s19 + %s2186_s13]]  ;;  %s525_s21 = scalar_lea.hbm %s2128_s3, %s864_s7 }
 0x14c   : > { %s1295_s6 = scalar_lea.hbm %s525_s21, 16  ;;  %p1300_p2 = scmp.lt.u32.totalorder %s525_s21, %s2128_s3 }
 0x14d   : > { %p1296_p10 = scmp.ne.s32.totalorder %s525_s21, %s1295_s6  ;;  %p1301_p5 = scmp.lt.u32.totalorder %s1634_s2, %s1295_s6 }
 0x14e   : > { %p1303_p0 = scmp.lt.u32.totalorder %s1295_s6, %s525_s21 }
 0x14f   : > { %p1297_p11 = pnand %p1296_p10, %p1807_p6  ;;  %p1302_p7 = por %p1301_p5, %p1300_p2 }
 0x151   : > { %p1298_p4 = pneg %p1297_p11  ;;  %p1304_p8 = por %p1303_p0, %p1302_p7 }
 0x153   : > { %p1305_p12 = pnand %p1304_p8, %p1298_p4 }
 0x155   : > { %1308 = shalt.err (!%p1305_p12)  }
 0x156   : > { %s1309_s25 = scalar_lea.vmem %s1909_s23, 16  ;;  %p1316_p3 = scmp.lt.s32.totalorder %s1909_s23, %s1618_s26 }
 0x157   : > { %p1310_p1 = scmp.ne.s32.totalorder %s1909_s23, %s1309_s25  ;;  %p1317_p10 = scmp.lt.s32.totalorder %s1645_s17, %s1309_s25 }
 0x159   : > { %p1311_p13 = pnand %p1310_p1, %p1807_p6  ;;  %p1318_p11 = por %p1317_p10, %p1316_p3 }
 0x15b   : > { %p1312_p9 = pneg %p1311_p13 }
 0x15d   : > { %p1319_p2 = pnand %p1318_p11, %p1312_p9 }
 0x15f   : > { %1322 = shalt.err (!%p1319_p2)  }
 0x160   : > { %908 = dma.hbm_to_vmem [thread:$0]  (%p1807_p6), %s525_s21, 16, %s1909_s23, %s1842_s12 }
 0x161   : > { %s912_s22 = scalar_select %p1807_p6, [#allocation5], [#allocation47] }
 0x162   : > { %s2188_s5 = smov (!%p1807_p6, %s556_s5), 0  ;;  %s772_s13 = scalar_lea.vmem %s1829_s20, 5 [#allocation2] }
 0x163   : > { %s573_s29 = sadd.s32 6, %s1814_s28  ;;  %s866_s19 = sshll.u32 %s1944_s8, 4 }
 0x164   : > { %s1975_s7 = sld [smem:[%s912_s22 + %s2188_s5]]  ;;  %s542_s6 = scalar_lea.hbm %s2128_s3, %s866_s19 }
 0x165   : > { %s569_s10 = sshll.u32 %s772_s13, 4  ;;  %s1323_s14 = scalar_lea.hbm %s542_s6, 16  ;;  %s570_s10 = int_to_ptr.vmem [resolvable:$true] %s569_s10 }
 0x166   : > { %p1324_p4 = scmp.ne.s32.totalorder %s542_s6, %s1323_s14  ;;  %p1328_p0 = scmp.lt.u32.totalorder %s542_s6, %s2128_s3 }
 0x167   : > { %p1329_p8 = scmp.lt.u32.totalorder %s1634_s2, %s1323_s14  ;;  %p1331_p1 = scmp.lt.u32.totalorder %s1323_s14, %s542_s6 }
 0x168   : > { %p1325_p5 = pnand %p1324_p4, %p1807_p6 }
 0x169   : > { %p1330_p12 = por %p1329_p8, %p1328_p0 }
 0x16a   : > { %p1326_p7 = pneg %p1325_p5 }
 0x16b   : > { %p1332_p13 = por %p1331_p1, %p1330_p12 }
 0x16d   : > { %p1333_p9 = pnand %p1332_p13, %p1326_p7 }
 0x16f   : > { %1336 = shalt.err (!%p1333_p9)  }
 0x170   : > { %s1337_s5 = scalar_lea.vmem %s1949_s1, 16  ;;  %p1344_p2 = scmp.lt.s32.totalorder %s1949_s1, %s1618_s26 }
 0x171   : > { %p1338_p3 = scmp.ne.s32.totalorder %s1949_s1, %s1337_s5  ;;  %p1345_p4 = scmp.lt.s32.totalorder %s1645_s17, %s1337_s5 }
 0x173   : > { %p1339_p10 = pnand %p1338_p3, %p1807_p6  ;;  %p1346_p5 = por %p1345_p4, %p1344_p2 }
 0x175   : > { %p1340_p11 = pneg %p1339_p10 }
 0x177   : > { %p1347_p0 = pnand %p1346_p5, %p1340_p11 }
 0x179   : > { %1350 = shalt.err (!%p1347_p0)  }
 0x17a   : > { %911 = dma.hbm_to_vmem [thread:$0]  (%p1807_p6), %s542_s6, 16, %s1949_s1, %s1842_s12 }
 0x17b   : > { %s915_s8 = scalar_select %p1807_p6, [#allocation5], [#allocation48] }
 0x17c   : > { %s2190_s29 = smov (!%p1807_p6, %s573_s29), 0  ;;  %s868_s25 = sshll.u32 %s1975_s7, 4 }
 0x17d   : > { %s777_s22 = scalar_lea.vmem %s1829_s20, 6 [#allocation2]  ;;  %s559_s27 = scalar_lea.hbm %s2128_s3, %s868_s25 }
 0x17e   : > { %s2006_s0 = sld [smem:[%s915_s8 + %s2190_s29]]  ;;  %s1351_s14 = scalar_lea.hbm %s559_s27, 16 }
 0x17f   : > { %p1352_p7 = scmp.ne.s32.totalorder %s559_s27, %s1351_s14  ;;  %p1356_p1 = scmp.lt.u32.totalorder %s559_s27, %s2128_s3 }
 0x180   : > { %p1357_p13 = scmp.lt.u32.totalorder %s1634_s2, %s1351_s14  ;;  %p1359_p3 = scmp.lt.u32.totalorder %s1351_s14, %s559_s27 }
 0x181   : > { %p1353_p8 = pnand %p1352_p7, %p1807_p6 }
 0x182   : > { %p1358_p9 = por %p1357_p13, %p1356_p1 }
 0x183   : > { %p1354_p12 = pneg %p1353_p8 }
 0x184   : > { %p1360_p10 = por %p1359_p3, %p1358_p9 }
 0x186   : > { %p1361_p11 = pnand %p1360_p10, %p1354_p12 }
 0x188   : > { %1364 = shalt.err (!%p1361_p11)  }
 0x189   : > { %s1365_s7 = scalar_lea.vmem %s570_s10, 16  ;;  %p1372_p0 = scmp.lt.s32.totalorder %s570_s10, %s1618_s26 }
 0x18a   : > { %p1366_p2 = scmp.ne.s32.totalorder %s570_s10, %s1365_s7  ;;  %p1373_p7 = scmp.lt.s32.totalorder %s1645_s17, %s1365_s7 }
 0x18c   : > { %p1367_p4 = pnand %p1366_p2, %p1807_p6  ;;  %p1374_p8 = por %p1373_p7, %p1372_p0 }
 0x18e   : > { %p1368_p5 = pneg %p1367_p4 }
 0x190   : > { %p1375_p1 = pnand %p1374_p8, %p1368_p5 }
 0x192   : > { %1378 = shalt.err (!%p1375_p1)  }
 0x193   : > { %914 = dma.hbm_to_vmem [thread:$0]  (%p1807_p6), %s559_s27, 16, %s570_s10, %s1842_s12 }
 0x194   : > { %s586_s29 = sshll.u32 %s777_s22, 4  ;;  %s590_s6 = sadd.s32 7, %s1814_s28  ;;  %s587_s29 = int_to_ptr.vmem [resolvable:$true] %s586_s29 }
 0x195   : > { %s918_s21 = scalar_select %p1807_p6, [#allocation5], [#allocation49] }
 0x196   : > { %s2192_s6 = smov (!%p1807_p6, %s590_s6), 0  ;;  %s782_s5 = scalar_lea.vmem %s1829_s20, 7 [#allocation2] }
 0x197   : > { %s870_s8 = sshll.u32 %s2006_s0, 4  ;;  %s591_s25 = sld [smem:[%s918_s21 + %s2192_s6]] }
 0x198   : > { %s576_s14 = scalar_lea.hbm %s2128_s3, %s870_s8  ;;  %s603_s23 = sshll.u32 %s782_s5, 4  ;;  %s604_s23 = int_to_ptr.vmem [resolvable:$true] %s603_s23 }
 0x199   : > { %s1379_s1 = scalar_lea.hbm %s576_s14, 16  ;;  %p1384_p3 = scmp.lt.u32.totalorder %s576_s14, %s2128_s3 }
 0x19a   : > { %p1380_p12 = scmp.ne.s32.totalorder %s576_s14, %s1379_s1  ;;  %p1385_p10 = scmp.lt.u32.totalorder %s1634_s2, %s1379_s1 }
 0x19b   : > { %p1387_p2 = scmp.lt.u32.totalorder %s1379_s1, %s576_s14 }
 0x19c   : > { %p1381_p13 = pnand %p1380_p12, %p1807_p6  ;;  %p1386_p11 = por %p1385_p10, %p1384_p3 }
 0x19e   : > { %p1382_p9 = pneg %p1381_p13  ;;  %p1388_p4 = por %p1387_p2, %p1386_p11 }
 0x1a0   : > { %p1389_p5 = pnand %p1388_p4, %p1382_p9 }
 0x1a2   : > { %1392 = shalt.err (!%p1389_p5)  }
 0x1a3   : > { %s1393_s20 = scalar_lea.vmem %s587_s29, 16  ;;  %p1400_p1 = scmp.lt.s32.totalorder %s587_s29, %s1618_s26 }
 0x1a4   : > { %p1394_p0 = scmp.ne.s32.totalorder %s587_s29, %s1393_s20  ;;  %p1401_p12 = scmp.lt.s32.totalorder %s1645_s17, %s1393_s20 }
 0x1a6   : > { %p1395_p7 = pnand %p1394_p0, %p1807_p6  ;;  %p1402_p13 = por %p1401_p12, %p1400_p1 }
 0x1a8   : > { %p1396_p8 = pneg %p1395_p7 }
 0x1aa   : > { %p1403_p3 = pnand %p1402_p13, %p1396_p8 }
 0x1ac   : > { %1406 = shalt.err (!%p1403_p3)  }
 0x1ad   : > { %917 = dma.hbm_to_vmem [thread:$0]  (%p1807_p6), %s576_s14, 16, %s587_s29, %s1842_s12 }
 0x1ae   : > { %s872_s22 = sshll.u32 %s591_s25, 4 }
 0x1af   : > { %s593_s7 = scalar_lea.hbm %s2128_s3, %s872_s22 }
 0x1b0   : > { %s1407_s6 = scalar_lea.hbm %s593_s7, 16  ;;  %p1412_p2 = scmp.lt.u32.totalorder %s593_s7, %s2128_s3 }
 0x1b1   : > { %p1408_p9 = scmp.ne.s32.totalorder %s593_s7, %s1407_s6  ;;  %p1413_p4 = scmp.lt.u32.totalorder %s1634_s2, %s1407_s6 }
 0x1b2   : > { %p1415_p0 = scmp.lt.u32.totalorder %s1407_s6, %s593_s7 }
 0x1b3   : > { %p1409_p10 = pnand %p1408_p9, %p1807_p6  ;;  %p1414_p5 = por %p1413_p4, %p1412_p2 }
 0x1b5   : > { %p1410_p11 = pneg %p1409_p10  ;;  %p1416_p7 = por %p1415_p0, %p1414_p5 }
 0x1b7   : > { %p1417_p8 = pnand %p1416_p7, %p1410_p11 }
 0x1b9   : > { %1420 = shalt.err (!%p1417_p8)  }
 0x1ba   : > { %s1421_s29 = scalar_lea.vmem %s604_s23, 16  ;;  %p1428_p3 = scmp.lt.s32.totalorder %s604_s23, %s1618_s26 }
 0x1bb   : > { %p1422_p1 = scmp.ne.s32.totalorder %s604_s23, %s1421_s29  ;;  %p1429_p9 = scmp.lt.s32.totalorder %s1645_s17, %s1421_s29 }
 0x1bd   : > { %p1423_p12 = pnand %p1422_p1, %p1807_p6  ;;  %p1430_p10 = por %p1429_p9, %p1428_p3 }
 0x1bf   : > { %p1424_p13 = pneg %p1423_p12 }
 0x1c1   : > { %p1431_p2 = pnand %p1430_p10, %p1424_p13 }
 0x1c3   : > { %1434 = shalt.err (!%p1431_p2)  }
 0x1c4   : > { %920 = dma.hbm_to_vmem [thread:$0]  (%p1807_p6), %s593_s7, 16, %s604_s23, %s1842_s12  ;;  %v874_v3 = vld [vmem:[%s2129_s4] ss:$0 sm:$0xff]  ;;  %v875_v4 = vld [vmem:[%s2129_s4 + $0x1] ss:$0 sm:$0xff]  ;;  %v614_v5 = vpop.permute.xlu0 %613 }
 0x1c5   : > { %vm615_vm1 = vcmp.eq.s32.totalorder %v614_v5, 1  ;;  %s296_s26 = scalar_lea.vmem [#allocation6], %s1609_s18  ;;  %s2160_s17 = sshll.u32 %s2178_s11, 3 }
 0x1c6   : > { %v624_v6 = vsel %vm615_vm1, %v874_v3, %v875_v4  ;;  %s626_s19 = scalar_lea.vmem [#allocation2], %s2160_s17  ;;  %s627_s16 = scalar_lea.sflag [#allocation3], %s2178_s11 }
 0x1c7   : > { %1481 = dma.done.wait %s627_s16, 128 }
 0x1c8   : > { %1482 = vsyncadd %s627_s16, 4294967168  ;;  %v631_v7 = vld [vmem:[%s626_s19] sm:$0xff]  ;;  %s2161_s12 = sld [smem:[#allocation61_spill]]  ;;  %s2162_s23 = sld [smem:[#allocation62_spill]] }
 0x1c9   : > { %v632_v8 = vld [vmem:[%s1827_s24] sm:$0xff]  ;;  %s880_s1 = sshll.u32 %s1578_s9, 7  ;;  %s678_s10 = sshll.u32 %s296_s26, 4  ;;  %s2083_s10 = int_to_ptr.vmem [resolvable:$true] %s678_s10 }
 0x1ca   : > { %v633_v9 = vadd.f32 %v632_v8, %v631_v7  ;;  %s2163_s22 = sld [smem:[#allocation63_spill]]  ;;  %s2164_s0 = sand.u32 1, %s1493_s30  }
 0x1cb   : > { %s665_s7 = scalar_lea.sflag [#allocation7], %s2164_s0  ;;  %s1435_s6 = scalar_lea.vmem %s2083_s10, 128 }
 0x1cc   : > { %v634_v10 = vadd.f32 %v633_v9, %v624_v6  ;;  %p1436_p6 = scmp.ne.s32.totalorder %s2083_s10, %s1435_s6  ;;  %p2165_p11 = scmp.ne.s32.totalorder %s2152_s15, 0 }
 0x1cd   : > { %s1513_s9 = smov [#allocation6]  }
 0x1ce   : > { %635 = vadd.xlane.f32.xlu0 %v634_v10  ;;  %v877_v19 = vld [vmem:[%s2161_s12] ss:$0 sm:$0xff]  ;;  %p1437_p4 = pnand %p1436_p6, %p2165_p11  ;;  %s1439_s21 = sshll.u32 %s1513_s9, 4  ;;  %s1440_s21 = int_to_ptr.vmem [resolvable:$false] %s1439_s21 }
 0x1cf   : > { %v878_v21 = vld [vmem:[%s2162_s23] ss:$0 sm:$0xff]  ;;  %s1441_s5 = scalar_lea.vmem %s1440_s21, 256  ;;  %p1442_p0 = scmp.lt.s32.totalorder %s2083_s10, %s1440_s21 }
 0x1d0   : > { %s2081_s27 = scalar_lea.hbm %s2163_s22, %s880_s1  ;;  %p1438_p5 = pneg %p1437_p4 }
 0x1d1   : > { %p1443_p7 = scmp.lt.s32.totalorder %s1441_s5, %s1435_s6 }
 0x1d3   : > { %p1444_p8 = por %p1443_p7, %p1442_p0 }
 0x1d5   : > { %p1445_p1 = pnand %p1444_p8, %p1438_p5 }
 0x25b   : > { %v636_v11 = vpop.xlane.xlu0 %635 }
 0x25c   : > { %v638_v12 = vmul.f32 0.0078125, %v636_v11 }
 0x25e   : > { %v639_v13 = vsub.f32 %v634_v10, %v638_v12 }
 0x260   : > { %v640_v14 = vmul.f32 %v639_v13, %v639_v13 }
 0x262   : > { %641 = vadd.xlane.f32.xlu0 %v640_v14 }
 0x2ef   : > { %v642_v15 = vpop.xlane.xlu0 %641 }
 0x2f0   : > { %v643_v16 = vmul.f32 0.0078125, %v642_v15 }
 0x2f2   : > { %v644_v17 = vadd.f32 1e-12, %v643_v16 }
 0x2f4   : > { %973 = vrsqrt.f32 %v644_v17 }
 0x2fe   : > { %v974_v18 = vpop.eup %973 }
 0x2ff   : > { %v646_v20 = vmul.f32 %v974_v18, %v639_v13 }
 0x301   : > { %v654_v22 = vmul.f32 %v877_v19, %v646_v20 }
 0x303   : > { %v662_v23 = vadd.f32 %v878_v21, %v654_v22 }
 0x305   : > { %663 = vst [vmem:[%s296_s26] sm:$0xff] %v662_v23 }
 0x306   : > { %1448 = shalt.err (!%p1445_p1)
}
 0x307   : > { %s1449_s29 = scalar_lea.hbm %s2081_s27, 128  ;;  %s1453_s25 = scalar_lea.hbm %s2163_s22, 512 }
 0x308   : > { %p1450_p12 = scmp.ne.s32.totalorder %s2081_s27, %s1449_s29  ;;  %p1454_p9 = scmp.lt.u32.totalorder %s2081_s27, %s2163_s22 }
 0x309   : > { %p1455_p10 = scmp.lt.u32.totalorder %s1453_s25, %s1449_s29  ;;  %p1457_p6 = scmp.lt.u32.totalorder %s1449_s29, %s2081_s27 }
 0x30a   : > { %p1451_p13 = pnand %p1450_p12, %p2165_p11 }
 0x30b   : > { %p1456_p2 = por %p1455_p10, %p1454_p9 }
 0x30c   : > { %p1452_p3 = pneg %p1451_p13 }
 0x30d   : > { %p1458_p4 = por %p1457_p6, %p1456_p2 }
 0x30f   : > { %p1459_p5 = pnand %p1458_p4, %p1452_p3 }
 0x311   : > { %1462 = shalt.err (!%p1459_p5)
}
 0x312   : > { %921 = dma.vmem_to_hbm [thread:$0]  (%p2165_p11), %s2083_s10, 128, %s2081_s27, %s665_s7  }
 0x313 PF: > { %s2166_s17 = sld [smem:[#allocation55_spill]]  ;;  %s2167_s19 = sld [smem:[#allocation53_spill]] }
 0x314   : > { %s2168_s16 = sld [smem:[#allocation58_spill]] }
 0x319   : > { %p929_p0 = scmp.ge.s32.totalorder %s2166_s17, 2  ;;  %s690_s18 = sand.u32 1, %s2167_s19  }
 0x31a   : > { %p2169_p7 = scmp.ne.s32.totalorder %s2168_s16, 0  ;;  %s691_s11 = scalar_lea.sflag [#allocation7], %s690_s18 }
 0x31c   : > { %p924_p8 = pnand %p929_p0, %p2169_p7 }
 0x31e   : > { %1484 = dma.done.wait (!%p924_p8), %s691_s11, 128  }
 0x31f   : > { %1486 = vsyncadd (!%p924_p8), %s691_s11, 4294967168  ;;  %s2170_s8 = sld [smem:[#allocation56_spill]]  ;;  %s2171_s12 = sld [smem:[#allocation54_spill]] }
 0x320   : > { %s2172_s0 = sld [smem:[#allocation57_spill]]  ;;  %s2173_s29 = smov %s1493_s30 }
 0x325   : > { %p23_p1 = scmp.ge.s32.totalorder %s2170_s8, 6   ;;  %s2174_s30 = smov %s2171_s12 }
 0x327   :  { %25 = sbr.rel (!%p23_p1) target bundleno = 20 (0x14), region = 185 }
 0x32e   :  { %696 = vsyncpa [#allocation7], 1 }
 0x32f   :  { %698 = vsyncpa [#allocation7 + $0x1], 1 }
 0x330   :  { %699 = vsyncmov [#allocation3] }
 0x333   :  { %s700_s15 = vpop.sfrf %699 }
 0x334   :  { %p883_p11 = scmp.ne.s32.totalorder %s700_s15, 0 }
 0x336   :  { %704 = shalt.err (%p883_p11)  }
 0x337   :  { %706 = vsyncmov [#allocation3 + $0x1] }
 0x33a   :  { %s707_s24 = vpop.sfrf %706 }
 0x33b   :  { %p884_p12 = scmp.ne.s32.totalorder %s707_s24, 0 }
 0x33d   :  { %711 = shalt.err (%p884_p12)  }

</bundles_post_ra>
